<compile_context>
chip_gen: v7x
topology: tpu7x:2x2x1
jax: 0.10.0
libtpu: 0.0.40
codegen_flags: <defaults>
</compile_context>

<pallas_src>
import functools
import math

import jax
import jax.numpy as jnp
import numpy as np
from jax import lax
from jax.experimental import pallas as pl
from jax.experimental.pallas import tpu as pltpu


def _make_gru_kernel(fuse: bool, n_chunks: int, hidden: int):
    """Build the recurrence kernel.

    fuse:      if True, a single (H, 3H) recurrent weight is passed (H%128==0);
               otherwise three separate (H, H) weights.
    n_chunks:  number of 8-timestep chunks inside one grid step (tile_t // 8).
    """
    H = hidden

    def kernel(*refs):
        if fuse:
            (gxr_ref, gxz_ref, gxn_ref, whh_ref, bhn_ref, out_ref, h_scr) = refs
            w_refs = (whh_ref,)
        else:
            (gxr_ref, gxz_ref, gxn_ref, whr_ref, whz_ref, whn_ref,
             bhn_ref, out_ref, h_scr) = refs
            w_refs = (whr_ref, whz_ref, whn_ref)

        # Reset the recurrent carry at the FIRST time block of each batch block
        # (time axis is grid axis 1; batch axis 0 may be megacore-parallel).
        @pl.when(pl.program_id(1) == 0)
        def _():
            h_scr[...] = jnp.zeros_like(h_scr)        # PyTorch default h0 = 0

        wdt = w_refs[0].dtype                          # matmul operand dtype
        bhn = bhn_ref[...].astype(jnp.float32)         # (1, H), hoisted once

        def recur(hm):
            if fuse:
                gh = jnp.dot(hm, w_refs[0][...],
                             preferred_element_type=jnp.float32)   # (B, 3H)
                return gh[:, :H], gh[:, H:2 * H], gh[:, 2 * H:]
            gh_r = jnp.dot(hm, w_refs[0][...], preferred_element_type=jnp.float32)
            gh_z = jnp.dot(hm, w_refs[1][...], preferred_element_type=jnp.float32)
            gh_n = jnp.dot(hm, w_refs[2][...], preferred_element_type=jnp.float32)
            return gh_r, gh_z, gh_n

        def chunk_body(c, h):
            off = c * 8
            if not isinstance(off, int):
                off = pl.multiple_of(off, 8)           # aligned sublane window
            # Aligned full-tile loads for 8 timesteps of each gate stream.
            gx_r = gxr_ref[:, pl.ds(off, 8), :].astype(jnp.float32)
            gx_z = gxz_ref[:, pl.ds(off, 8), :].astype(jnp.float32)
            gx_n = gxn_ref[:, pl.ds(off, 8), :].astype(jnp.float32)
            hs = []
            for tt in range(8):                        # static 8-step unroll
                gh_r, gh_z, gh_n = recur(h.astype(wdt))
                # Gate math stays f32 (v5e VPU/EUP have no bf16; parity).
                r = jax.nn.sigmoid(gx_r[:, tt, :] + gh_r)
                z = jax.nn.sigmoid(gx_z[:, tt, :] + gh_z)
                n = jnp.tanh(gx_n[:, tt, :] + r * (gh_n + bhn))
                h = (1.0 - z) * n + z * h
                hs.append(h)
            # One aligned (B, 8, H) store instead of 8 masked sublane stores.
            out_ref[:, pl.ds(off, 8), :] = jnp.stack(hs, axis=1).astype(out_ref.dtype)
            return h

        h = h_scr[...]                                 # (B_blk, H) f32 carry
        if n_chunks == 1:
            h = chunk_body(0, h)
        else:
            h = lax.fori_loop(0, n_chunks, chunk_body, h)
        h_scr[...] = h

    return kernel


def gru_forward(x, w_ih, w_hh, b_ih, b_hh, *, tile_t=32,
                matmul_dtype=jnp.float32, gate_dtype=jnp.float32,
                batch_block=None):
    """x: (B, T, F) float32.  Returns (outputs (B,T,H), hidden (1,B,H)).

    tile_t:       timesteps per grid step (multiple of 8; clamped to ~T).
    matmul_dtype: operand dtype of the in-kernel recurrent matmuls (f32 for
                  exact parity; bf16 appropriate on v6e/v7x, acc stays f32).
    gate_dtype:   dtype of the streamed gate inputs (bf16 halves HBM traffic,
                  mainly a v5e win; validate tolerance before enabling).
    batch_block:  optional batch tile -> leading "parallel" grid axis (v7x 2TC).
    """
    B, T, F = x.shape
    H = w_hh.shape[1]

    def round_up(a, m):
        return -(-a // m) * m

    # --- split PyTorch-packed gates (order: reset, update, new) -------------
    w_ir, w_iz, w_in = w_ih[:H], w_ih[H:2 * H], w_ih[2 * H:]
    b_ir, b_iz, b_in = b_ih[:H], b_ih[H:2 * H], b_ih[2 * H:]
    b_hr, b_hz, b_hn = b_hh[:H], b_hh[H:2 * H], b_hh[2 * H:]

    # --- hoisted input projection: parallel over ALL timesteps (XLA) --------
    # (r/z biases pre-folded; b_hn must stay inside the recurrence.)
    gx_r = (jnp.einsum("btf,hf->bth", x, w_ir) + (b_ir + b_hr)).astype(gate_dtype)
    gx_z = (jnp.einsum("btf,hf->bth", x, w_iz) + (b_iz + b_hz)).astype(gate_dtype)
    gx_n = (jnp.einsum("btf,hf->bth", x, w_in) + b_in).astype(gate_dtype)

    # --- block the time axis (tile_t multiple of 8, no larger than needed) --
    tile_t = max(8, round_up(min(int(tile_t), round_up(T, 8)), 8))
    n_tblk = -(-T // tile_t)
    T_pad = n_tblk * tile_t
    if T_pad != T:
        pad = ((0, 0), (0, T_pad - T), (0, 0))
        gx_r = jnp.pad(gx_r, pad)
        gx_z = jnp.pad(gx_z, pad)
        gx_n = jnp.pad(gx_n, pad)
    n_chunks = tile_t // 8

    # --- optional batch-parallel grid axis (megacore / v7x 2 TCs) -----------
    if batch_block is None or batch_block <= 0 or B % batch_block != 0:
        batch_block = B
    n_bblk = B // batch_block

    # --- recurrent weight prep ----------------------------------------------
    fuse = (H % 128 == 0)      # lane-aligned r/z/n split only when H % 128 == 0
    if fuse:
        # w_hh is (3H, H) rows [W_hr; W_hz; W_hn]; transpose -> (H, 3H) with
        # columns [r | z | n], so h @ whh_fused gives the packed gates.
        weight_args = (jnp.transpose(w_hh).astype(matmul_dtype),)
        weight_specs = [pl.BlockSpec((H, 3 * H), lambda b, t: (0, 0))]
    else:
        w_hr, w_hz, w_hn = w_hh[:H], w_hh[H:2 * H], w_hh[2 * H:]
        weight_args = (jnp.transpose(w_hr).astype(matmul_dtype),
                       jnp.transpose(w_hz).astype(matmul_dtype),
                       jnp.transpose(w_hn).astype(matmul_dtype))
        wspec = pl.BlockSpec((H, H), lambda b, t: (0, 0))
        weight_specs = [wspec, wspec, wspec]

    bhn2 = b_hn.reshape(1, H).astype(jnp.float32)

    gate_spec = pl.BlockSpec((batch_block, tile_t, H), lambda b, t: (b, t, 0))
    out_spec = pl.BlockSpec((batch_block, tile_t, H), lambda b, t: (b, t, 0))

    # --- explicit VMEM budget (double-buffered streams + weights) -----------
    gate_bytes = jnp.dtype(gate_dtype).itemsize
    w_bytes = jnp.dtype(matmul_dtype).itemsize
    stream = batch_block * tile_t * H
    vmem_need = (2 * 3 * stream * gate_bytes     # gx_r/z/n, double-buffered
                 + 2 * stream * 4                # output, double-buffered
                 + 2 * 3 * H * H * w_bytes       # recurrent weights
                 + 2 * H * 4                     # b_hn
                 + batch_block * H * 4)          # carry scratch
    vmem_limit = int(min(64 << 20, max(vmem_need + (4 << 20), 16 << 20)))

    cost = pl.CostEstimate(
        flops=int(T_pad) * B * (6 * H * H + 12 * H),
        transcendentals=3 * int(T_pad) * B * H,
        bytes_accessed=int(3 * B * T_pad * H * gate_bytes
                           + B * T_pad * H * 4
                           + 3 * H * H * w_bytes + 4 * H),
    )

    kernel = _make_gru_kernel(fuse, n_chunks, H)

    out_full = pl.pallas_call(
        kernel,
        out_shape=jax.ShapeDtypeStruct((B, T_pad, H), jnp.float32),
        grid_spec=pltpu.PrefetchScalarGridSpec(
            num_scalar_prefetch=0,
            grid=(n_bblk, n_tblk),
            in_specs=[gate_spec, gate_spec, gate_spec,
                      *weight_specs,
                      pl.BlockSpec((1, H), lambda b, t: (0, 0))],
            out_specs=out_spec,
            scratch_shapes=[pltpu.VMEM((batch_block, H), jnp.float32)],
        ),
        compiler_params=pltpu.CompilerParams(
            # batch blocks are independent (carry reset at t==0); time is
            # the sequential recurrence axis.
            dimension_semantics=("parallel", "arbitrary"),
            vmem_limit_bytes=vmem_limit,
        ),
        cost_estimate=cost,
    )(gx_r, gx_z, gx_n, *weight_args, bhn2)

    outputs = out_full[:, :T]                  # (B, T, H), batch_first
    hidden = out_full[:, T - 1][None]          # (1, B, H), matches nn.GRU
    return outputs, hidden


def gru_reference(x, w_ih, w_hh, b_ih, b_hh):
    """Pure-JAX reference of torch.nn.GRU(batch_first=True) forward."""
    B, T, F = x.shape
    H = w_hh.shape[1]

    def step(h, x_t):
        gx = x_t @ w_ih.T + b_ih
        gh = h @ w_hh.T + b_hh
        r = jax.nn.sigmoid(gx[:, :H] + gh[:, :H])
        z = jax.nn.sigmoid(gx[:, H:2 * H] + gh[:, H:2 * H])
        n = jnp.tanh(gx[:, 2 * H:] + r * gh[:, 2 * H:])
        h_new = (1.0 - z) * n + z * h
        return h_new, h_new

    h0 = jnp.zeros((B, H), jnp.float32)
    h_last, ys = jax.lax.scan(step, h0, jnp.transpose(x, (1, 0, 2)))
    return jnp.transpose(ys, (1, 0, 2)), h_last[None]


if __name__ == "__main__":
    def init_params(key, F, H):
        # nn.GRU init: U(-1/sqrt(H), 1/sqrt(H))
        bound = 1.0 / math.sqrt(H)
        k1, k2, k3, k4 = jax.random.split(key, 4)
        w_ih = jax.random.uniform(k1, (3 * H, F), jnp.float32, -bound, bound)
        w_hh = jax.random.uniform(k2, (3 * H, H), jnp.float32, -bound, bound)
        b_ih = jax.random.uniform(k3, (3 * H,), jnp.float32, -bound, bound)
        b_hh = jax.random.uniform(k4, (3 * H,), jnp.float32, -bound, bound)
        return w_ih, w_hh, b_ih, b_hh

    key = jax.random.PRNGKey(0)

    # ---- Test 1: Encoder(n_features=4, hidden_dim=32), x = (2, 8, 4) -------
    # (separate-weight path, single chunk, single batch block)
    B, T, F, H = 2, 8, 4, 32
    kx, kp = jax.random.split(key)
    x = jax.random.normal(kx, (B, T, F), jnp.float32)
    params = init_params(kp, F, H)

    fwd = jax.jit(gru_forward)
    outputs, hidden = fwd(x, *params)
    jax.block_until_ready((outputs, hidden))

    ref_out, ref_hid = gru_reference(x, *params)
    assert outputs.shape == (B, T, H) and hidden.shape == (1, B, H)
    np.testing.assert_allclose(np.asarray(outputs), np.asarray(ref_out),
                               rtol=1e-4, atol=1e-4)
    np.testing.assert_allclose(np.asarray(hidden), np.asarray(ref_hid),
                               rtol=1e-4, atol=1e-4)

    # ---- Test 2: fused (H,3H) recurrent weight, multi-chunk fori_loop, -----
    #      time padding and the batch-parallel grid axis.
    B2, T2, F2, H2 = 4, 40, 8, 128
    kx2, kp2 = jax.random.split(kp)
    x2 = jax.random.normal(kx2, (B2, T2, F2), jnp.float32)
    params2 = init_params(kp2, F2, H2)

    fwd2 = jax.jit(functools.partial(gru_forward, tile_t=32, batch_block=2))
    out2, hid2 = fwd2(x2, *params2)
    jax.block_until_ready((out2, hid2))

    ref_out2, ref_hid2 = gru_reference(x2, *params2)
    assert out2.shape == (B2, T2, H2) and hid2.shape == (1, B2, H2)
    np.testing.assert_allclose(np.asarray(out2), np.asarray(ref_out2),
                               rtol=1e-4, atol=1e-4)
    np.testing.assert_allclose(np.asarray(hid2), np.asarray(ref_hid2),
                               rtol=1e-4, atol=1e-4)

    print("KERNEL_OK")
</pallas_src>

<mosaic_0001>
module attributes {stable_mosaic.version = 11 : i64} {
  func.func @kernel(%arg0: i32, %arg1: i32, %arg2: memref<2x8x32xf32, #tpu.memory_space<vmem>>, %arg3: memref<2x8x32xf32, #tpu.memory_space<vmem>>, %arg4: memref<2x8x32xf32, #tpu.memory_space<vmem>>, %arg5: memref<32x32xf32, #tpu.memory_space<vmem>>, %arg6: memref<32x32xf32, #tpu.memory_space<vmem>>, %arg7: memref<32x32xf32, #tpu.memory_space<vmem>>, %arg8: memref<1x32xf32, #tpu.memory_space<vmem>>, %arg9: memref<2x8x32xf32, #tpu.memory_space<vmem>>, %arg10: memref<2x32xf32, #tpu.memory_space<vmem>>) attributes {dimension_semantics = [#tpu.dimension_semantics<parallel>, #tpu.dimension_semantics<arbitrary>], iteration_bounds = array<i64: 1, 1>, scalar_prefetch = 0 : i64, scratch_operands = 1 : i64, tpu.core_type = #tpu.core_type<tc>, window_params = [{transform_indices = @transform_0, window_bounds = array<i64: 2, 8, 32>}, {transform_indices = @transform_1, window_bounds = array<i64: 2, 8, 32>}, {transform_indices = @transform_2, window_bounds = array<i64: 2, 8, 32>}, {pipeline_mode = #tpu.pipeline_mode<synchronous>, transform_indices = @transform_3, window_bounds = array<i64: 32, 32>}, {pipeline_mode = #tpu.pipeline_mode<synchronous>, transform_indices = @transform_4, window_bounds = array<i64: 32, 32>}, {pipeline_mode = #tpu.pipeline_mode<synchronous>, transform_indices = @transform_5, window_bounds = array<i64: 32, 32>}, {pipeline_mode = #tpu.pipeline_mode<synchronous>, transform_indices = @transform_6, window_bounds = array<i64: 1, 32>}, {transform_indices = @transform_7, window_bounds = array<i64: 2, 8, 32>}]} {
    %c0_i32 = arith.constant 0 : i32
    %0 = arith.cmpi eq, %arg1, %c0_i32 : i32
    %1 = arith.extui %0 : i1 to i32
    %c0_i32_0 = arith.constant 0 : i32
    %2 = arith.cmpi ne, %1, %c0_i32_0 : i32
    scf.if %2 {
      %cst_113 = arith.constant 0.000000e+00 : f32
      %291 = vector.broadcast %cst_113 : f32 to vector<2x32xf32>
      %c0_114 = arith.constant 0 : index
      %c0_115 = arith.constant 0 : index
      %292 = vector.load %arg10[%c0_114, %c0_115] : memref<2x32xf32, #tpu.memory_space<vmem>>, vector<2x32xf32>
      tpu.vector_store %arg10[%c0_114, %c0_115], %291 {strides = array<i32>} : memref<2x32xf32, #tpu.memory_space<vmem>>, vector<2x32xf32>,
    } else {
    }
    %c0 = arith.constant 0 : index
    %c0_1 = arith.constant 0 : index
    %3 = vector.load %arg8[%c0, %c0_1] : memref<1x32xf32, #tpu.memory_space<vmem>>, vector<1x32xf32>
    %c0_2 = arith.constant 0 : index
    %c0_3 = arith.constant 0 : index
    %4 = vector.load %arg10[%c0_2, %c0_3] : memref<2x32xf32, #tpu.memory_space<vmem>>, vector<2x32xf32>
    %c0_4 = arith.constant 0 : index
    %c0_5 = arith.constant 0 : index
    %c0_6 = arith.constant 0 : index
    %5 = vector.load %arg2[%c0_4, %c0_5, %c0_6] : memref<2x8x32xf32, #tpu.memory_space<vmem>>, vector<2x8x32xf32>
    %c0_7 = arith.constant 0 : index
    %c0_8 = arith.constant 0 : index
    %c0_9 = arith.constant 0 : index
    %6 = vector.load %arg3[%c0_7, %c0_8, %c0_9] : memref<2x8x32xf32, #tpu.memory_space<vmem>>, vector<2x8x32xf32>
    %c0_10 = arith.constant 0 : index
    %c0_11 = arith.constant 0 : index
    %c0_12 = arith.constant 0 : index
    %7 = vector.load %arg4[%c0_10, %c0_11, %c0_12] : memref<2x8x32xf32, #tpu.memory_space<vmem>>, vector<2x8x32xf32>
    %c0_13 = arith.constant 0 : index
    %c0_14 = arith.constant 0 : index
    %8 = vector.load %arg5[%c0_13, %c0_14] : memref<32x32xf32, #tpu.memory_space<vmem>>, vector<32x32xf32>
    %cst = arith.constant dense<0.000000e+00> : vector<2x32xf32>
    %9 = tpu.matmul %4, %8, %cst {dimension_numbers = #tpu.dot_dimension_numbers<[1], [0], [0], [1], [0, 0, 1, 1], [], []>} : vector<2x32xf32>, vector<32x32xf32>, vector<2x32xf32> -> vector<2x32xf32>
    %c0_15 = arith.constant 0 : index
    %c0_16 = arith.constant 0 : index
    %10 = vector.load %arg6[%c0_15, %c0_16] : memref<32x32xf32, #tpu.memory_space<vmem>>, vector<32x32xf32>
    %cst_17 = arith.constant dense<0.000000e+00> : vector<2x32xf32>
    %11 = tpu.matmul %4, %10, %cst_17 {dimension_numbers = #tpu.dot_dimension_numbers<[1], [0], [0], [1], [0, 0, 1, 1], [], []>} : vector<2x32xf32>, vector<32x32xf32>, vector<2x32xf32> -> vector<2x32xf32>
    %c0_18 = arith.constant 0 : index
    %c0_19 = arith.constant 0 : index
    %12 = vector.load %arg7[%c0_18, %c0_19] : memref<32x32xf32, #tpu.memory_space<vmem>>, vector<32x32xf32>
    %cst_20 = arith.constant dense<0.000000e+00> : vector<2x32xf32>
    %13 = tpu.matmul %4, %12, %cst_20 {dimension_numbers = #tpu.dot_dimension_numbers<[1], [0], [0], [1], [0, 0, 1, 1], [], []>} : vector<2x32xf32>, vector<32x32xf32>, vector<2x32xf32> -> vector<2x32xf32>
    %14 = vector.extract_strided_slice %5 {offsets = [0, 0, 0], sizes = [2, 1, 32], strides = [1, 1, 1]} : vector<2x8x32xf32> to vector<2x1x32xf32>
    %15 = vector.shape_cast %14 : vector<2x1x32xf32> to vector<2x32xf32>
    %16 = arith.addf %15, %9 : vector<2x32xf32>
    %17 = arith.negf %16 : vector<2x32xf32>
    %18 = math.exp %17 : vector<2x32xf32>
    %cst_21 = arith.constant 1.000000e+00 : f32
    %19 = vector.broadcast %cst_21 : f32 to vector<2x32xf32>
    %20 = arith.addf %19, %18 : vector<2x32xf32>
    %21 = arith.divf %19, %20 : vector<2x32xf32>
    %22 = vector.extract_strided_slice %6 {offsets = [0, 0, 0], sizes = [2, 1, 32], strides = [1, 1, 1]} : vector<2x8x32xf32> to vector<2x1x32xf32>
    %23 = vector.shape_cast %22 : vector<2x1x32xf32> to vector<2x32xf32>
    %24 = arith.addf %23, %11 : vector<2x32xf32>
    %25 = arith.negf %24 : vector<2x32xf32>
    %26 = math.exp %25 : vector<2x32xf32>
    %cst_22 = arith.constant 1.000000e+00 : f32
    %27 = vector.broadcast %cst_22 : f32 to vector<2x32xf32>
    %28 = arith.addf %27, %26 : vector<2x32xf32>
    %29 = arith.divf %27, %28 : vector<2x32xf32>
    %30 = vector.extract_strided_slice %7 {offsets = [0, 0, 0], sizes = [2, 1, 32], strides = [1, 1, 1]} : vector<2x8x32xf32> to vector<2x1x32xf32>
    %31 = vector.shape_cast %30 : vector<2x1x32xf32> to vector<2x32xf32>
    %32 = vector.broadcast %3 : vector<1x32xf32> to vector<2x32xf32>
    %33 = arith.addf %13, %32 : vector<2x32xf32>
    %34 = arith.mulf %21, %33 : vector<2x32xf32>
    %35 = arith.addf %31, %34 : vector<2x32xf32>
    %36 = math.tanh %35 : vector<2x32xf32>
    %cst_23 = arith.constant 1.000000e+00 : f32
    %37 = vector.broadcast %cst_23 : f32 to vector<2x32xf32>
    %38 = arith.subf %37, %29 : vector<2x32xf32>
    %39 = arith.mulf %38, %36 : vector<2x32xf32>
    %40 = arith.mulf %29, %4 : vector<2x32xf32>
    %41 = arith.addf %39, %40 : vector<2x32xf32>
    %c0_24 = arith.constant 0 : index
    %c0_25 = arith.constant 0 : index
    %42 = vector.load %arg5[%c0_24, %c0_25] : memref<32x32xf32, #tpu.memory_space<vmem>>, vector<32x32xf32>
    %cst_26 = arith.constant dense<0.000000e+00> : vector<2x32xf32>
    %43 = tpu.matmul %41, %42, %cst_26 {dimension_numbers = #tpu.dot_dimension_numbers<[1], [0], [0], [1], [0, 0, 1, 1], [], []>} : vector<2x32xf32>, vector<32x32xf32>, vector<2x32xf32> -> vector<2x32xf32>
    %c0_27 = arith.constant 0 : index
    %c0_28 = arith.constant 0 : index
    %44 = vector.load %arg6[%c0_27, %c0_28] : memref<32x32xf32, #tpu.memory_space<vmem>>, vector<32x32xf32>
    %cst_29 = arith.constant dense<0.000000e+00> : vector<2x32xf32>
    %45 = tpu.matmul %41, %44, %cst_29 {dimension_numbers = #tpu.dot_dimension_numbers<[1], [0], [0], [1], [0, 0, 1, 1], [], []>} : vector<2x32xf32>, vector<32x32xf32>, vector<2x32xf32> -> vector<2x32xf32>
    %c0_30 = arith.constant 0 : index
    %c0_31 = arith.constant 0 : index
    %46 = vector.load %arg7[%c0_30, %c0_31] : memref<32x32xf32, #tpu.memory_space<vmem>>, vector<32x32xf32>
    %cst_32 = arith.constant dense<0.000000e+00> : vector<2x32xf32>
    %47 = tpu.matmul %41, %46, %cst_32 {dimension_numbers = #tpu.dot_dimension_numbers<[1], [0], [0], [1], [0, 0, 1, 1], [], []>} : vector<2x32xf32>, vector<32x32xf32>, vector<2x32xf32> -> vector<2x32xf32>
    %48 = vector.extract_strided_slice %5 {offsets = [0, 1, 0], sizes = [2, 1, 32], strides = [1, 1, 1]} : vector<2x8x32xf32> to vector<2x1x32xf32>
    %49 = vector.shape_cast %48 : vector<2x1x32xf32> to vector<2x32xf32>
    %50 = arith.addf %49, %43 : vector<2x32xf32>
    %51 = arith.negf %50 : vector<2x32xf32>
    %52 = math.exp %51 : vector<2x32xf32>
    %cst_33 = arith.constant 1.000000e+00 : f32
    %53 = vector.broadcast %cst_33 : f32 to vector<2x32xf32>
    %54 = arith.addf %53, %52 : vector<2x32xf32>
    %55 = arith.divf %53, %54 : vector<2x32xf32>
    %56 = vector.extract_strided_slice %6 {offsets = [0, 1, 0], sizes = [2, 1, 32], strides = [1, 1, 1]} : vector<2x8x32xf32> to vector<2x1x32xf32>
    %57 = vector.shape_cast %56 : vector<2x1x32xf32> to vector<2x32xf32>
    %58 = arith.addf %57, %45 : vector<2x32xf32>
    %59 = arith.negf %58 : vector<2x32xf32>
    %60 = math.exp %59 : vector<2x32xf32>
    %cst_34 = arith.constant 1.000000e+00 : f32
    %61 = vector.broadcast %cst_34 : f32 to vector<2x32xf32>
    %62 = arith.addf %61, %60 : vector<2x32xf32>
    %63 = arith.divf %61, %62 : vector<2x32xf32>
    %64 = vector.extract_strided_slice %7 {offsets = [0, 1, 0], sizes = [2, 1, 32], strides = [1, 1, 1]} : vector<2x8x32xf32> to vector<2x1x32xf32>
    %65 = vector.shape_cast %64 : vector<2x1x32xf32> to vector<2x32xf32>
    %66 = vector.broadcast %3 : vector<1x32xf32> to vector<2x32xf32>
    %67 = arith.addf %47, %66 : vector<2x32xf32>
    %68 = arith.mulf %55, %67 : vector<2x32xf32>
    %69 = arith.addf %65, %68 : vector<2x32xf32>
    %70 = math.tanh %69 : vector<2x32xf32>
    %cst_35 = arith.constant 1.000000e+00 : f32
    %71 = vector.broadcast %cst_35 : f32 to vector<2x32xf32>
    %72 = arith.subf %71, %63 : vector<2x32xf32>
    %73 = arith.mulf %72, %70 : vector<2x32xf32>
    %74 = arith.mulf %63, %41 : vector<2x32xf32>
    %75 = arith.addf %73, %74 : vector<2x32xf32>
    %c0_36 = arith.constant 0 : index
    %c0_37 = arith.constant 0 : index
    %76 = vector.load %arg5[%c0_36, %c0_37] : memref<32x32xf32, #tpu.memory_space<vmem>>, vector<32x32xf32>
    %cst_38 = arith.constant dense<0.000000e+00> : vector<2x32xf32>
    %77 = tpu.matmul %75, %76, %cst_38 {dimension_numbers = #tpu.dot_dimension_numbers<[1], [0], [0], [1], [0, 0, 1, 1], [], []>} : vector<2x32xf32>, vector<32x32xf32>, vector<2x32xf32> -> vector<2x32xf32>
    %c0_39 = arith.constant 0 : index
    %c0_40 = arith.constant 0 : index
    %78 = vector.load %arg6[%c0_39, %c0_40] : memref<32x32xf32, #tpu.memory_space<vmem>>, vector<32x32xf32>
    %cst_41 = arith.constant dense<0.000000e+00> : vector<2x32xf32>
    %79 = tpu.matmul %75, %78, %cst_41 {dimension_numbers = #tpu.dot_dimension_numbers<[1], [0], [0], [1], [0, 0, 1, 1], [], []>} : vector<2x32xf32>, vector<32x32xf32>, vector<2x32xf32> -> vector<2x32xf32>
    %c0_42 = arith.constant 0 : index
    %c0_43 = arith.constant 0 : index
    %80 = vector.load %arg7[%c0_42, %c0_43] : memref<32x32xf32, #tpu.memory_space<vmem>>, vector<32x32xf32>
    %cst_44 = arith.constant dense<0.000000e+00> : vector<2x32xf32>
    %81 = tpu.matmul %75, %80, %cst_44 {dimension_numbers = #tpu.dot_dimension_numbers<[1], [0], [0], [1], [0, 0, 1, 1], [], []>} : vector<2x32xf32>, vector<32x32xf32>, vector<2x32xf32> -> vector<2x32xf32>
    %82 = vector.extract_strided_slice %5 {offsets = [0, 2, 0], sizes = [2, 1, 32], strides = [1, 1, 1]} : vector<2x8x32xf32> to vector<2x1x32xf32>
    %83 = vector.shape_cast %82 : vector<2x1x32xf32> to vector<2x32xf32>
    %84 = arith.addf %83, %77 : vector<2x32xf32>
    %85 = arith.negf %84 : vector<2x32xf32>
    %86 = math.exp %85 : vector<2x32xf32>
    %cst_45 = arith.constant 1.000000e+00 : f32
    %87 = vector.broadcast %cst_45 : f32 to vector<2x32xf32>
    %88 = arith.addf %87, %86 : vector<2x32xf32>
    %89 = arith.divf %87, %88 : vector<2x32xf32>
    %90 = vector.extract_strided_slice %6 {offsets = [0, 2, 0], sizes = [2, 1, 32], strides = [1, 1, 1]} : vector<2x8x32xf32> to vector<2x1x32xf32>
    %91 = vector.shape_cast %90 : vector<2x1x32xf32> to vector<2x32xf32>
    %92 = arith.addf %91, %79 : vector<2x32xf32>
    %93 = arith.negf %92 : vector<2x32xf32>
    %94 = math.exp %93 : vector<2x32xf32>
    %cst_46 = arith.constant 1.000000e+00 : f32
    %95 = vector.broadcast %cst_46 : f32 to vector<2x32xf32>
    %96 = arith.addf %95, %94 : vector<2x32xf32>
    %97 = arith.divf %95, %96 : vector<2x32xf32>
    %98 = vector.extract_strided_slice %7 {offsets = [0, 2, 0], sizes = [2, 1, 32], strides = [1, 1, 1]} : vector<2x8x32xf32> to vector<2x1x32xf32>
    %99 = vector.shape_cast %98 : vector<2x1x32xf32> to vector<2x32xf32>
    %100 = vector.broadcast %3 : vector<1x32xf32> to vector<2x32xf32>
    %101 = arith.addf %81, %100 : vector<2x32xf32>
    %102 = arith.mulf %89, %101 : vector<2x32xf32>
    %103 = arith.addf %99, %102 : vector<2x32xf32>
    %104 = math.tanh %103 : vector<2x32xf32>
    %cst_47 = arith.constant 1.000000e+00 : f32
    %105 = vector.broadcast %cst_47 : f32 to vector<2x32xf32>
    %106 = arith.subf %105, %97 : vector<2x32xf32>
    %107 = arith.mulf %106, %104 : vector<2x32xf32>
    %108 = arith.mulf %97, %75 : vector<2x32xf32>
    %109 = arith.addf %107, %108 : vector<2x32xf32>
    %c0_48 = arith.constant 0 : index
    %c0_49 = arith.constant 0 : index
    %110 = vector.load %arg5[%c0_48, %c0_49] : memref<32x32xf32, #tpu.memory_space<vmem>>, vector<32x32xf32>
    %cst_50 = arith.constant dense<0.000000e+00> : vector<2x32xf32>
    %111 = tpu.matmul %109, %110, %cst_50 {dimension_numbers = #tpu.dot_dimension_numbers<[1], [0], [0], [1], [0, 0, 1, 1], [], []>} : vector<2x32xf32>, vector<32x32xf32>, vector<2x32xf32> -> vector<2x32xf32>
    %c0_51 = arith.constant 0 : index
    %c0_52 = arith.constant 0 : index
    %112 = vector.load %arg6[%c0_51, %c0_52] : memref<32x32xf32, #tpu.memory_space<vmem>>, vector<32x32xf32>
    %cst_53 = arith.constant dense<0.000000e+00> : vector<2x32xf32>
    %113 = tpu.matmul %109, %112, %cst_53 {dimension_numbers = #tpu.dot_dimension_numbers<[1], [0], [0], [1], [0, 0, 1, 1], [], []>} : vector<2x32xf32>, vector<32x32xf32>, vector<2x32xf32> -> vector<2x32xf32>
    %c0_54 = arith.constant 0 : index
    %c0_55 = arith.constant 0 : index
    %114 = vector.load %arg7[%c0_54, %c0_55] : memref<32x32xf32, #tpu.memory_space<vmem>>, vector<32x32xf32>
    %cst_56 = arith.constant dense<0.000000e+00> : vector<2x32xf32>
    %115 = tpu.matmul %109, %114, %cst_56 {dimension_numbers = #tpu.dot_dimension_numbers<[1], [0], [0], [1], [0, 0, 1, 1], [], []>} : vector<2x32xf32>, vector<32x32xf32>, vector<2x32xf32> -> vector<2x32xf32>
    %116 = vector.extract_strided_slice %5 {offsets = [0, 3, 0], sizes = [2, 1, 32], strides = [1, 1, 1]} : vector<2x8x32xf32> to vector<2x1x32xf32>
    %117 = vector.shape_cast %116 : vector<2x1x32xf32> to vector<2x32xf32>
    %118 = arith.addf %117, %111 : vector<2x32xf32>
    %119 = arith.negf %118 : vector<2x32xf32>
    %120 = math.exp %119 : vector<2x32xf32>
    %cst_57 = arith.constant 1.000000e+00 : f32
    %121 = vector.broadcast %cst_57 : f32 to vector<2x32xf32>
    %122 = arith.addf %121, %120 : vector<2x32xf32>
    %123 = arith.divf %121, %122 : vector<2x32xf32>
    %124 = vector.extract_strided_slice %6 {offsets = [0, 3, 0], sizes = [2, 1, 32], strides = [1, 1, 1]} : vector<2x8x32xf32> to vector<2x1x32xf32>
    %125 = vector.shape_cast %124 : vector<2x1x32xf32> to vector<2x32xf32>
    %126 = arith.addf %125, %113 : vector<2x32xf32>
    %127 = arith.negf %126 : vector<2x32xf32>
    %128 = math.exp %127 : vector<2x32xf32>
    %cst_58 = arith.constant 1.000000e+00 : f32
    %129 = vector.broadcast %cst_58 : f32 to vector<2x32xf32>
    %130 = arith.addf %129, %128 : vector<2x32xf32>
    %131 = arith.divf %129, %130 : vector<2x32xf32>
    %132 = vector.extract_strided_slice %7 {offsets = [0, 3, 0], sizes = [2, 1, 32], strides = [1, 1, 1]} : vector<2x8x32xf32> to vector<2x1x32xf32>
    %133 = vector.shape_cast %132 : vector<2x1x32xf32> to vector<2x32xf32>
    %134 = vector.broadcast %3 : vector<1x32xf32> to vector<2x32xf32>
    %135 = arith.addf %115, %134 : vector<2x32xf32>
    %136 = arith.mulf %123, %135 : vector<2x32xf32>
    %137 = arith.addf %133, %136 : vector<2x32xf32>
    %138 = math.tanh %137 : vector<2x32xf32>
    %cst_59 = arith.constant 1.000000e+00 : f32
    %139 = vector.broadcast %cst_59 : f32 to vector<2x32xf32>
    %140 = arith.subf %139, %131 : vector<2x32xf32>
    %141 = arith.mulf %140, %138 : vector<2x32xf32>
    %142 = arith.mulf %131, %109 : vector<2x32xf32>
    %143 = arith.addf %141, %142 : vector<2x32xf32>
    %c0_60 = arith.constant 0 : index
    %c0_61 = arith.constant 0 : index
    %144 = vector.load %arg5[%c0_60, %c0_61] : memref<32x32xf32, #tpu.memory_space<vmem>>, vector<32x32xf32>
    %cst_62 = arith.constant dense<0.000000e+00> : vector<2x32xf32>
    %145 = tpu.matmul %143, %144, %cst_62 {dimension_numbers = #tpu.dot_dimension_numbers<[1], [0], [0], [1], [0, 0, 1, 1], [], []>} : vector<2x32xf32>, vector<32x32xf32>, vector<2x32xf32> -> vector<2x32xf32>
    %c0_63 = arith.constant 0 : index
    %c0_64 = arith.constant 0 : index
    %146 = vector.load %arg6[%c0_63, %c0_64] : memref<32x32xf32, #tpu.memory_space<vmem>>, vector<32x32xf32>
    %cst_65 = arith.constant dense<0.000000e+00> : vector<2x32xf32>
    %147 = tpu.matmul %143, %146, %cst_65 {dimension_numbers = #tpu.dot_dimension_numbers<[1], [0], [0], [1], [0, 0, 1, 1], [], []>} : vector<2x32xf32>, vector<32x32xf32>, vector<2x32xf32> -> vector<2x32xf32>
    %c0_66 = arith.constant 0 : index
    %c0_67 = arith.constant 0 : index
    %148 = vector.load %arg7[%c0_66, %c0_67] : memref<32x32xf32, #tpu.memory_space<vmem>>, vector<32x32xf32>
    %cst_68 = arith.constant dense<0.000000e+00> : vector<2x32xf32>
    %149 = tpu.matmul %143, %148, %cst_68 {dimension_numbers = #tpu.dot_dimension_numbers<[1], [0], [0], [1], [0, 0, 1, 1], [], []>} : vector<2x32xf32>, vector<32x32xf32>, vector<2x32xf32> -> vector<2x32xf32>
    %150 = vector.extract_strided_slice %5 {offsets = [0, 4, 0], sizes = [2, 1, 32], strides = [1, 1, 1]} : vector<2x8x32xf32> to vector<2x1x32xf32>
    %151 = vector.shape_cast %150 : vector<2x1x32xf32> to vector<2x32xf32>
    %152 = arith.addf %151, %145 : vector<2x32xf32>
    %153 = arith.negf %152 : vector<2x32xf32>
    %154 = math.exp %153 : vector<2x32xf32>
    %cst_69 = arith.constant 1.000000e+00 : f32
    %155 = vector.broadcast %cst_69 : f32 to vector<2x32xf32>
    %156 = arith.addf %155, %154 : vector<2x32xf32>
    %157 = arith.divf %155, %156 : vector<2x32xf32>
    %158 = vector.extract_strided_slice %6 {offsets = [0, 4, 0], sizes = [2, 1, 32], strides = [1, 1, 1]} : vector<2x8x32xf32> to vector<2x1x32xf32>
    %159 = vector.shape_cast %158 : vector<2x1x32xf32> to vector<2x32xf32>
    %160 = arith.addf %159, %147 : vector<2x32xf32>
    %161 = arith.negf %160 : vector<2x32xf32>
    %162 = math.exp %161 : vector<2x32xf32>
    %cst_70 = arith.constant 1.000000e+00 : f32
    %163 = vector.broadcast %cst_70 : f32 to vector<2x32xf32>
    %164 = arith.addf %163, %162 : vector<2x32xf32>
    %165 = arith.divf %163, %164 : vector<2x32xf32>
    %166 = vector.extract_strided_slice %7 {offsets = [0, 4, 0], sizes = [2, 1, 32], strides = [1, 1, 1]} : vector<2x8x32xf32> to vector<2x1x32xf32>
    %167 = vector.shape_cast %166 : vector<2x1x32xf32> to vector<2x32xf32>
    %168 = vector.broadcast %3 : vector<1x32xf32> to vector<2x32xf32>
    %169 = arith.addf %149, %168 : vector<2x32xf32>
    %170 = arith.mulf %157, %169 : vector<2x32xf32>
    %171 = arith.addf %167, %170 : vector<2x32xf32>
    %172 = math.tanh %171 : vector<2x32xf32>
    %cst_71 = arith.constant 1.000000e+00 : f32
    %173 = vector.broadcast %cst_71 : f32 to vector<2x32xf32>
    %174 = arith.subf %173, %165 : vector<2x32xf32>
    %175 = arith.mulf %174, %172 : vector<2x32xf32>
    %176 = arith.mulf %165, %143 : vector<2x32xf32>
    %177 = arith.addf %175, %176 : vector<2x32xf32>
    %c0_72 = arith.constant 0 : index
    %c0_73 = arith.constant 0 : index
    %178 = vector.load %arg5[%c0_72, %c0_73] : memref<32x32xf32, #tpu.memory_space<vmem>>, vector<32x32xf32>
    %cst_74 = arith.constant dense<0.000000e+00> : vector<2x32xf32>
    %179 = tpu.matmul %177, %178, %cst_74 {dimension_numbers = #tpu.dot_dimension_numbers<[1], [0], [0], [1], [0, 0, 1, 1], [], []>} : vector<2x32xf32>, vector<32x32xf32>, vector<2x32xf32> -> vector<2x32xf32>
    %c0_75 = arith.constant 0 : index
    %c0_76 = arith.constant 0 : index
    %180 = vector.load %arg6[%c0_75, %c0_76] : memref<32x32xf32, #tpu.memory_space<vmem>>, vector<32x32xf32>
    %cst_77 = arith.constant dense<0.000000e+00> : vector<2x32xf32>
    %181 = tpu.matmul %177, %180, %cst_77 {dimension_numbers = #tpu.dot_dimension_numbers<[1], [0], [0], [1], [0, 0, 1, 1], [], []>} : vector<2x32xf32>, vector<32x32xf32>, vector<2x32xf32> -> vector<2x32xf32>
    %c0_78 = arith.constant 0 : index
    %c0_79 = arith.constant 0 : index
    %182 = vector.load %arg7[%c0_78, %c0_79] : memref<32x32xf32, #tpu.memory_space<vmem>>, vector<32x32xf32>
    %cst_80 = arith.constant dense<0.000000e+00> : vector<2x32xf32>
    %183 = tpu.matmul %177, %182, %cst_80 {dimension_numbers = #tpu.dot_dimension_numbers<[1], [0], [0], [1], [0, 0, 1, 1], [], []>} : vector<2x32xf32>, vector<32x32xf32>, vector<2x32xf32> -> vector<2x32xf32>
    %184 = vector.extract_strided_slice %5 {offsets = [0, 5, 0], sizes = [2, 1, 32], strides = [1, 1, 1]} : vector<2x8x32xf32> to vector<2x1x32xf32>
    %185 = vector.shape_cast %184 : vector<2x1x32xf32> to vector<2x32xf32>
    %186 = arith.addf %185, %179 : vector<2x32xf32>
    %187 = arith.negf %186 : vector<2x32xf32>
    %188 = math.exp %187 : vector<2x32xf32>
    %cst_81 = arith.constant 1.000000e+00 : f32
    %189 = vector.broadcast %cst_81 : f32 to vector<2x32xf32>
    %190 = arith.addf %189, %188 : vector<2x32xf32>
    %191 = arith.divf %189, %190 : vector<2x32xf32>
    %192 = vector.extract_strided_slice %6 {offsets = [0, 5, 0], sizes = [2, 1, 32], strides = [1, 1, 1]} : vector<2x8x32xf32> to vector<2x1x32xf32>
    %193 = vector.shape_cast %192 : vector<2x1x32xf32> to vector<2x32xf32>
    %194 = arith.addf %193, %181 : vector<2x32xf32>
    %195 = arith.negf %194 : vector<2x32xf32>
    %196 = math.exp %195 : vector<2x32xf32>
    %cst_82 = arith.constant 1.000000e+00 : f32
    %197 = vector.broadcast %cst_82 : f32 to vector<2x32xf32>
    %198 = arith.addf %197, %196 : vector<2x32xf32>
    %199 = arith.divf %197, %198 : vector<2x32xf32>
    %200 = vector.extract_strided_slice %7 {offsets = [0, 5, 0], sizes = [2, 1, 32], strides = [1, 1, 1]} : vector<2x8x32xf32> to vector<2x1x32xf32>
    %201 = vector.shape_cast %200 : vector<2x1x32xf32> to vector<2x32xf32>
    %202 = vector.broadcast %3 : vector<1x32xf32> to vector<2x32xf32>
    %203 = arith.addf %183, %202 : vector<2x32xf32>
    %204 = arith.mulf %191, %203 : vector<2x32xf32>
    %205 = arith.addf %201, %204 : vector<2x32xf32>
    %206 = math.tanh %205 : vector<2x32xf32>
    %cst_83 = arith.constant 1.000000e+00 : f32
    %207 = vector.broadcast %cst_83 : f32 to vector<2x32xf32>
    %208 = arith.subf %207, %199 : vector<2x32xf32>
    %209 = arith.mulf %208, %206 : vector<2x32xf32>
    %210 = arith.mulf %199, %177 : vector<2x32xf32>
    %211 = arith.addf %209, %210 : vector<2x32xf32>
    %c0_84 = arith.constant 0 : index
    %c0_85 = arith.constant 0 : index
    %212 = vector.load %arg5[%c0_84, %c0_85] : memref<32x32xf32, #tpu.memory_space<vmem>>, vector<32x32xf32>
    %cst_86 = arith.constant dense<0.000000e+00> : vector<2x32xf32>
    %213 = tpu.matmul %211, %212, %cst_86 {dimension_numbers = #tpu.dot_dimension_numbers<[1], [0], [0], [1], [0, 0, 1, 1], [], []>} : vector<2x32xf32>, vector<32x32xf32>, vector<2x32xf32> -> vector<2x32xf32>
    %c0_87 = arith.constant 0 : index
    %c0_88 = arith.constant 0 : index
    %214 = vector.load %arg6[%c0_87, %c0_88] : memref<32x32xf32, #tpu.memory_space<vmem>>, vector<32x32xf32>
    %cst_89 = arith.constant dense<0.000000e+00> : vector<2x32xf32>
    %215 = tpu.matmul %211, %214, %cst_89 {dimension_numbers = #tpu.dot_dimension_numbers<[1], [0], [0], [1], [0, 0, 1, 1], [], []>} : vector<2x32xf32>, vector<32x32xf32>, vector<2x32xf32> -> vector<2x32xf32>
    %c0_90 = arith.constant 0 : index
    %c0_91 = arith.constant 0 : index
    %216 = vector.load %arg7[%c0_90, %c0_91] : memref<32x32xf32, #tpu.memory_space<vmem>>, vector<32x32xf32>
    %cst_92 = arith.constant dense<0.000000e+00> : vector<2x32xf32>
    %217 = tpu.matmul %211, %216, %cst_92 {dimension_numbers = #tpu.dot_dimension_numbers<[1], [0], [0], [1], [0, 0, 1, 1], [], []>} : vector<2x32xf32>, vector<32x32xf32>, vector<2x32xf32> -> vector<2x32xf32>
    %218 = vector.extract_strided_slice %5 {offsets = [0, 6, 0], sizes = [2, 1, 32], strides = [1, 1, 1]} : vector<2x8x32xf32> to vector<2x1x32xf32>
    %219 = vector.shape_cast %218 : vector<2x1x32xf32> to vector<2x32xf32>
    %220 = arith.addf %219, %213 : vector<2x32xf32>
    %221 = arith.negf %220 : vector<2x32xf32>
    %222 = math.exp %221 : vector<2x32xf32>
    %cst_93 = arith.constant 1.000000e+00 : f32
    %223 = vector.broadcast %cst_93 : f32 to vector<2x32xf32>
    %224 = arith.addf %223, %222 : vector<2x32xf32>
    %225 = arith.divf %223, %224 : vector<2x32xf32>
    %226 = vector.extract_strided_slice %6 {offsets = [0, 6, 0], sizes = [2, 1, 32], strides = [1, 1, 1]} : vector<2x8x32xf32> to vector<2x1x32xf32>
    %227 = vector.shape_cast %226 : vector<2x1x32xf32> to vector<2x32xf32>
    %228 = arith.addf %227, %215 : vector<2x32xf32>
    %229 = arith.negf %228 : vector<2x32xf32>
    %230 = math.exp %229 : vector<2x32xf32>
    %cst_94 = arith.constant 1.000000e+00 : f32
    %231 = vector.broadcast %cst_94 : f32 to vector<2x32xf32>
    %232 = arith.addf %231, %230 : vector<2x32xf32>
    %233 = arith.divf %231, %232 : vector<2x32xf32>
    %234 = vector.extract_strided_slice %7 {offsets = [0, 6, 0], sizes = [2, 1, 32], strides = [1, 1, 1]} : vector<2x8x32xf32> to vector<2x1x32xf32>
    %235 = vector.shape_cast %234 : vector<2x1x32xf32> to vector<2x32xf32>
    %236 = vector.broadcast %3 : vector<1x32xf32> to vector<2x32xf32>
    %237 = arith.addf %217, %236 : vector<2x32xf32>
    %238 = arith.mulf %225, %237 : vector<2x32xf32>
    %239 = arith.addf %235, %238 : vector<2x32xf32>
    %240 = math.tanh %239 : vector<2x32xf32>
    %cst_95 = arith.constant 1.000000e+00 : f32
    %241 = vector.broadcast %cst_95 : f32 to vector<2x32xf32>
    %242 = arith.subf %241, %233 : vector<2x32xf32>
    %243 = arith.mulf %242, %240 : vector<2x32xf32>
    %244 = arith.mulf %233, %211 : vector<2x32xf32>
    %245 = arith.addf %243, %244 : vector<2x32xf32>
    %c0_96 = arith.constant 0 : index
    %c0_97 = arith.constant 0 : index
    %246 = vector.load %arg5[%c0_96, %c0_97] : memref<32x32xf32, #tpu.memory_space<vmem>>, vector<32x32xf32>
    %cst_98 = arith.constant dense<0.000000e+00> : vector<2x32xf32>
    %247 = tpu.matmul %245, %246, %cst_98 {dimension_numbers = #tpu.dot_dimension_numbers<[1], [0], [0], [1], [0, 0, 1, 1], [], []>} : vector<2x32xf32>, vector<32x32xf32>, vector<2x32xf32> -> vector<2x32xf32>
    %c0_99 = arith.constant 0 : index
    %c0_100 = arith.constant 0 : index
    %248 = vector.load %arg6[%c0_99, %c0_100] : memref<32x32xf32, #tpu.memory_space<vmem>>, vector<32x32xf32>
    %cst_101 = arith.constant dense<0.000000e+00> : vector<2x32xf32>
    %249 = tpu.matmul %245, %248, %cst_101 {dimension_numbers = #tpu.dot_dimension_numbers<[1], [0], [0], [1], [0, 0, 1, 1], [], []>} : vector<2x32xf32>, vector<32x32xf32>, vector<2x32xf32> -> vector<2x32xf32>
    %c0_102 = arith.constant 0 : index
    %c0_103 = arith.constant 0 : index
    %250 = vector.load %arg7[%c0_102, %c0_103] : memref<32x32xf32, #tpu.memory_space<vmem>>, vector<32x32xf32>
    %cst_104 = arith.constant dense<0.000000e+00> : vector<2x32xf32>
    %251 = tpu.matmul %245, %250, %cst_104 {dimension_numbers = #tpu.dot_dimension_numbers<[1], [0], [0], [1], [0, 0, 1, 1], [], []>} : vector<2x32xf32>, vector<32x32xf32>, vector<2x32xf32> -> vector<2x32xf32>
    %252 = vector.extract_strided_slice %5 {offsets = [0, 7, 0], sizes = [2, 1, 32], strides = [1, 1, 1]} : vector<2x8x32xf32> to vector<2x1x32xf32>
    %253 = vector.shape_cast %252 : vector<2x1x32xf32> to vector<2x32xf32>
    %254 = arith.addf %253, %247 : vector<2x32xf32>
    %255 = arith.negf %254 : vector<2x32xf32>
    %256 = math.exp %255 : vector<2x32xf32>
    %cst_105 = arith.constant 1.000000e+00 : f32
    %257 = vector.broadcast %cst_105 : f32 to vector<2x32xf32>
    %258 = arith.addf %257, %256 : vector<2x32xf32>
    %259 = arith.divf %257, %258 : vector<2x32xf32>
    %260 = vector.extract_strided_slice %6 {offsets = [0, 7, 0], sizes = [2, 1, 32], strides = [1, 1, 1]} : vector<2x8x32xf32> to vector<2x1x32xf32>
    %261 = vector.shape_cast %260 : vector<2x1x32xf32> to vector<2x32xf32>
    %262 = arith.addf %261, %249 : vector<2x32xf32>
    %263 = arith.negf %262 : vector<2x32xf32>
    %264 = math.exp %263 : vector<2x32xf32>
    %cst_106 = arith.constant 1.000000e+00 : f32
    %265 = vector.broadcast %cst_106 : f32 to vector<2x32xf32>
    %266 = arith.addf %265, %264 : vector<2x32xf32>
    %267 = arith.divf %265, %266 : vector<2x32xf32>
    %268 = vector.extract_strided_slice %7 {offsets = [0, 7, 0], sizes = [2, 1, 32], strides = [1, 1, 1]} : vector<2x8x32xf32> to vector<2x1x32xf32>
    %269 = vector.shape_cast %268 : vector<2x1x32xf32> to vector<2x32xf32>
    %270 = vector.broadcast %3 : vector<1x32xf32> to vector<2x32xf32>
    %271 = arith.addf %251, %270 : vector<2x32xf32>
    %272 = arith.mulf %259, %271 : vector<2x32xf32>
    %273 = arith.addf %269, %272 : vector<2x32xf32>
    %274 = math.tanh %273 : vector<2x32xf32>
    %cst_107 = arith.constant 1.000000e+00 : f32
    %275 = vector.broadcast %cst_107 : f32 to vector<2x32xf32>
    %276 = arith.subf %275, %267 : vector<2x32xf32>
    %277 = arith.mulf %276, %274 : vector<2x32xf32>
    %278 = arith.mulf %267, %245 : vector<2x32xf32>
    %279 = arith.addf %277, %278 : vector<2x32xf32>
    %280 = vector.shape_cast %41 : vector<2x32xf32> to vector<2x1x32xf32>
    %281 = vector.shape_cast %75 : vector<2x32xf32> to vector<2x1x32xf32>
    %282 = vector.shape_cast %109 : vector<2x32xf32> to vector<2x1x32xf32>
    %283 = vector.shape_cast %143 : vector<2x32xf32> to vector<2x1x32xf32>
    %284 = vector.shape_cast %177 : vector<2x32xf32> to vector<2x1x32xf32>
    %285 = vector.shape_cast %211 : vector<2x32xf32> to vector<2x1x32xf32>
    %286 = vector.shape_cast %245 : vector<2x32xf32> to vector<2x1x32xf32>
    %287 = vector.shape_cast %279 : vector<2x32xf32> to vector<2x1x32xf32>
    %288 = tpu.concatenate %280, %281, %282, %283, %284, %285, %286, %287 in 1 : vector<2x1x32xf32>, vector<2x1x32xf32>, vector<2x1x32xf32>, vector<2x1x32xf32>, vector<2x1x32xf32>, vector<2x1x32xf32>, vector<2x1x32xf32>, vector<2x1x32xf32> -> vector<2x8x32xf32>
    %c0_108 = arith.constant 0 : index
    %c0_109 = arith.constant 0 : index
    %c0_110 = arith.constant 0 : index
    %289 = vector.load %arg9[%c0_108, %c0_109, %c0_110] : memref<2x8x32xf32, #tpu.memory_space<vmem>>, vector<2x8x32xf32>
    tpu.vector_store %arg9[%c0_108, %c0_109, %c0_110], %288 {strides = array<i32>} : memref<2x8x32xf32, #tpu.memory_space<vmem>>, vector<2x8x32xf32>,
    %c0_111 = arith.constant 0 : index
    %c0_112 = arith.constant 0 : index
    %290 = vector.load %arg10[%c0_111, %c0_112] : memref<2x32xf32, #tpu.memory_space<vmem>>, vector<2x32xf32>
    tpu.vector_store %arg10[%c0_111, %c0_112], %279 {strides = array<i32>} : memref<2x32xf32, #tpu.memory_space<vmem>>, vector<2x32xf32>,
    return
  }
  func.func @transform_0(%arg0: i32, %arg1: i32) -> (i32, i32, i32) {
    %c0_i32 = arith.constant 0 : i32
    %c0_i32_0 = arith.constant 0 : i32
    return %arg0, %arg1, %c0_i32 : i32, i32, i32
  }
  func.func @transform_1(%arg0: i32, %arg1: i32) -> (i32, i32, i32) {
    %c0_i32 = arith.constant 0 : i32
    %c0_i32_0 = arith.constant 0 : i32
    return %arg0, %arg1, %c0_i32 : i32, i32, i32
  }
  func.func @transform_2(%arg0: i32, %arg1: i32) -> (i32, i32, i32) {
    %c0_i32 = arith.constant 0 : i32
    %c0_i32_0 = arith.constant 0 : i32
    return %arg0, %arg1, %c0_i32 : i32, i32, i32
  }
  func.func @transform_3(%arg0: i32, %arg1: i32) -> (i32, i32) {
    %c0_i32 = arith.constant 0 : i32
    %c0_i32_0 = arith.constant 0 : i32
    %c0_i32_1 = arith.constant 0 : i32
    return %c0_i32, %c0_i32_0 : i32, i32
  }
  func.func @transform_4(%arg0: i32, %arg1: i32) -> (i32, i32) {
    %c0_i32 = arith.constant 0 : i32
    %c0_i32_0 = arith.constant 0 : i32
    %c0_i32_1 = arith.constant 0 : i32
    return %c0_i32, %c0_i32_0 : i32, i32
  }
  func.func @transform_5(%arg0: i32, %arg1: i32) -> (i32, i32) {
    %c0_i32 = arith.constant 0 : i32
    %c0_i32_0 = arith.constant 0 : i32
    %c0_i32_1 = arith.constant 0 : i32
    return %c0_i32, %c0_i32_0 : i32, i32
  }
  func.func @transform_6(%arg0: i32, %arg1: i32) -> (i32, i32) {
    %c0_i32 = arith.constant 0 : i32
    %c0_i32_0 = arith.constant 0 : i32
    %c0_i32_1 = arith.constant 0 : i32
    return %c0_i32, %c0_i32_0 : i32, i32
  }
  func.func @transform_7(%arg0: i32, %arg1: i32) -> (i32, i32, i32) {
    %c0_i32 = arith.constant 0 : i32
    %c0_i32_0 = arith.constant 0 : i32
    return %arg0, %arg1, %c0_i32 : i32, i32, i32
  }
}

</mosaic_0001>

<bundles_post_ra>
// kernel: gru_forward.1
= control target key start
LH: loop header
LB: loop body
LE: loop exit
PB: predicated region body
PF: predicated region fallthrough
CT: control target
= control target key end

     0   :  { %vm30_vm0 = vcmask 254976   ;;  %v3061_v0 = vmov 0.0|0.0   ;;  %vm3062_vm1 = vmmov 0   ;;  %v3063_v4 = vmov 0.0   ;;  %s3551_s3 = inlined_call_operand.vmem [shape: f32[32,32], index: 3, kind: input, shape index: {}]   ;;  %s3552_s4 = inlined_call_operand.vmem [shape: f32[32,32], index: 4, kind: input, shape index: {}]   ;;  %s3553_s5 = inlined_call_operand.vmem [shape: f32[32,32], index: 5, kind: input, shape index: {}]   ;;  %s3554_s0 = inlined_call_operand.vmem [shape: f32[2,8,32], index: 0, kind: input, shape index: {}]   ;;  %s3555_s1 = inlined_call_operand.vmem [shape: f32[2,8,32], index: 1, kind: input, shape index: {}]   ;;  %s3556_s6 = inlined_call_operand.vmem [shape: f32[1,32], index: 6, kind: input, shape index: {}]   ;;  %s3557_s2 = inlined_call_operand.vmem [shape: f32[2,8,32], index: 2, kind: input, shape index: {}]   ;;  %s3558_s7 = inlined_call_operand.vmem [shape: f32[2,8,32], index: 7, kind: output, shape index: {}]  }
   0x1   :  { %2747 = vmatprep.subr.bf16.mxu0 %v3061_v0  ;;  %v40_v1 = vld [vmem:[%s3551_s3] sm:$0xff]  ;;  %v41_v2 = vld [vmem:[%s3551_s3 + $0x8] sm:$0xff]  ;;  %v42_v3 = vld [vmem:[%s3551_s3 + $0x10] sm:$0xff]  ;;  %2491 = vmatprep.mubr.msk.f32.mxu0 %vm3062_vm1, %v3063_v4  ;;  %31 = vst.msk [vmem:[#allocation2] sm:$0x3] %vm30_vm0, %v3063_v4  ;;  %vm44_vm2 = vcmask 261120  }
   0x2   :  { %v3117_v5 = vpack.c.bf16 %v41_v2, %v40_v1  ;;  %v43_v6 = vld [vmem:[%s3551_s3 + $0x18] sm:$0xff]  ;;  %2753 = vmatprep.subr.bf16.mxu1 %v3061_v0  ;;  %v118_v7 = vld [vmem:[%s3552_s4] sm:$0xff]  ;;  %v119_v8 = vld [vmem:[%s3552_s4 + $0x8] sm:$0xff]  ;;  %2502 = vmatprep.mubr.msk.f32.mxu1 %vm3062_vm1, %v3063_v4  ;;  %vm332_vm3 = vcmask 1041409   ;;  %vm2270_vm4 = vcmask 1040384   ;;  %vm2273_vm5 = vcmask 1041408  }
   0x3   :  { %v3131_v9 = vpack.c.bf16 %v119_v8, %v118_v7  ;;  %v120_v10 = vld [vmem:[%s3552_s4 + $0x10] sm:$0xff]  ;;  %v121_v11 = vld [vmem:[%s3552_s4 + $0x18] sm:$0xff]  ;;  %v3140_v12 = vpack.c.bf16 %v43_v6, %v42_v3  ;;  %v192_v14 = vld [vmem:[%s3553_s5] sm:$0xff]  ;;  %vm2276_vm6 = vcmask 1042432   ;;  %vm2279_vm7 = vcmask 1043456  }
   0x4   :  { %2749 = vmatpush3.bf16.msra.mxu0 %v3117_v5  ;;  %v3144_v13 = vpack.c.bf16 %v121_v11, %v120_v10  ;;  %v193_v15 = vld [vmem:[%s3553_s5 + $0x8] sm:$0xff]  ;;  %v194_v18 = vld [vmem:[%s3553_s5 + $0x10] sm:$0xff]  ;;  %v195_v19 = vld [vmem:[%s3553_s5 + $0x18] sm:$0xff]  ;;  %vm2282_vm8 = vcmask 1044480   ;;  %vm2285_vm9 = vcmask 1045504   ;;  %vm2288_vm10 = vcmask 1046528  }
   0x5   :  { %2750 = vmatprep.subr.bf16.mxu0 %v3061_v0  ;;  %2755 = vmatpush3.bf16.msra.mxu1 %v3131_v9  ;;  %v3156_v17 = vpack.c.bf16 %v193_v15, %v192_v14  ;;  %v3172_v20 = vpack.c.bf16 %v195_v19, %v194_v18  ;;  %v3196_v21 = vld [vmem:[%s3554_s0] sm:$0xff]  ;;  %v3206_v23 = vld [vmem:[%s3554_s0 + $0x8] sm:$0xff]  ;;  %vm2298_vm11 = vcmask 261127   ;;  %vm2300_vm12 = vcmask 253952  }
   0x6   :  { %2756 = vmatprep.subr.bf16.mxu1 %v3061_v0  ;;  %v3201_v22 = vld [vmem:[%s3555_s1] sm:$0xff]  ;;  %v3212_v28 = vld [vmem:[%s3555_s1 + $0x8] sm:$0xff] }
   0x7   :  { %v3220_v46 = vld [vmem:[%s3556_s6] ss:$0 sm:$0xff]  ;;  %v3231_v56 = vld [vmem:[%s3557_s2 + $0x8] sm:$0xff] }
   0x8   :  { %2752 = vmatpush3.bf16.msra.mxu0 %v3140_v12  ;;  %v3154_v16 = vld [vmem:[#allocation2] sm:$0x3] }
   0x9   :  { %2758 = vmatpush3.bf16.msra.mxu1 %v3144_v13  ;;  %2759 = vmatprep.subr.bf16.mxu0 %v3061_v0  ;;  %v3226_v53 = vld [vmem:[%s3557_s2] sm:$0xff]  ;;  %v322_v1 = vrot.slane %v3154_v16, 1 }
   0xa   :  { %2765 = vmatprep.subr.bf16.mxu1 %v3061_v0 }
   0xb   :  { %2492 = vmatmul.mubr.msk.f32.vlgmr.msra.gmra.mrb[0].mxu0 %vm44_vm2, %v3154_v16 }
   0xc   :  { %2503 = vmatmul.mubr.msk.f32.vlgmr.msra.gmra.mrb[0].mxu1 %vm44_vm2, %v3154_v16  ;;  %2761 = vmatpush3.bf16.msra.mxu0 %v3156_v17 }
   0xd   :  { %2762 = vmatprep.subr.bf16.mxu0 %v3061_v0  ;;  %2513 = vmatprep.mubr.msk.f32.mxu0 %vm3062_vm1, %v3063_v4 }
   0xe   :  { %2767 = vmatpush3.bf16.msra.mxu1 %v3117_v5  ;;  %2524 = vmatprep.mubr.msk.f32.mxu1 %vm3062_vm1, %v3063_v4 }
   0xf   :  { %2768 = vmatprep.subr.bf16.mxu1 %v3061_v0 }
  0x10   :  { %2764 = vmatpush3.bf16.msra.mxu0 %v3172_v20 }
  0x11   :  { %2771 = vmatprep.subr.bf16.mxu0 %v3061_v0 }
  0x12   :  { %2770 = vmatpush3.bf16.msra.mxu1 %v3140_v12 }
  0x13   :  { %2514 = vmatmul.mubr.msk.f32.vlgmr.msra.gmra.mrb[2].mxu0 %vm44_vm2, %v3154_v16  ;;  %2777 = vmatprep.subr.bf16.mxu1 %v3061_v0 }
  0x14   :  { %2773 = vmatpush3.bf16.msra.mxu0 %v3131_v9  ;;  %2535 = vmatprep.mubr.msk.f32.mxu0 %vm3062_vm1, %v3063_v4 }
  0x15   :  { %2774 = vmatprep.subr.bf16.mxu0 %v3061_v0 }
  0x18   :  { %2776 = vmatpush3.bf16.msra.mxu0 %v3144_v13 }
  0x19   :  { %2783 = vmatprep.subr.bf16.mxu0 %v3061_v0 }
  0xde   :  { %v114_v24 = vpop.f32.mrb[0].mxu0 }
  0xdf   :  { %v197_v25 = vrot.slane %v114_v24, 1  ;;  %v200_v26 = vadd.f32 %v114_v24, %v3196_v21  ;;  %v2493_v27 = vpop.f32.mrb[1].mxu0  ;;  %v188_v29 = vpop.f32.mrb[0].mxu1 }
  0xe0   :  { %v215_v30 = vrot.slane %v188_v29, 1  ;;  %v218_v31 = vadd.f32 %v188_v29, %v3201_v22  ;;  %v2504_v32 = vpop.f32.mrb[1].mxu1 }
  0xe1   :  { %v201_v33 = vadd.f32 %v197_v25, %v3206_v23  ;;  %v2308_v34 = vmul.f32 -1.442695, %v200_v26 }
  0xe2   :  { %v219_v35 = vadd.f32 %v215_v30, %v3212_v28  ;;  %v2310_v37 = vmul.f32 -1.442695, %v218_v31 }
  0xe3   :  { %2894 = vpow2.f32 %v2308_v34  ;;  %v2309_v36 = vmul.f32 -1.442695, %v201_v33 }
  0xe4   :  { %v2311_v38 = vmul.f32 -1.442695, %v219_v35 }
  0xe5   :  { %2896 = vpow2.f32 %v2309_v36 }
  0xe6   :  { %v304_v39 = vpop.f32.mrb[2].mxu0  ;;  %2898 = vpow2.f32 %v2310_v37 }
  0xe7   :  { %v2515_v40 = vpop.f32.mrb[3].mxu0  ;;  %2900 = vpow2.f32 %v2311_v38  ;;  %v305_v49 = vadd.f32 %v3220_v46, %v304_v39 }
  0xe9   :  { %v309_v51 = vrot.slane %v305_v49, 1 }
  0xed   :  { %v2895_v41 = vpop.eup %2894 }
  0xee   :  { %v208_v42 = vadd.f32 1.0, %v2895_v41 }
  0xef   :  { %v2897_v43 = vpop.eup %2896 }
  0xf0   :  { %v209_v44 = vadd.f32 1.0, %v2897_v43  ;;  %2902 = vrcp.f32 %v208_v42  ;;  %v2899_v45 = vpop.eup %2898 }
  0xf1   :  { %v2901_v47 = vpop.eup %2900  ;;  %v226_v48 = vadd.f32 1.0, %v2899_v45 }
  0xf2   :  { %2904 = vrcp.f32 %v209_v44  ;;  %v227_v50 = vadd.f32 1.0, %v2901_v47 }
  0xf3   :  { %2906 = vrcp.f32 %v226_v48 }
  0xf4   :  { %2908 = vrcp.f32 %v227_v50 }
  0xfa   :  { %v2903_v52 = vpop.eup %2902 }
  0xfb   :  { %v312_v54 = vmul.f32 %v2903_v52, %v305_v49 }
  0xfc   :  { %v2905_v55 = vpop.eup %2904 }
  0xfd   :  { %v313_v57 = vmul.f32 %v2905_v55, %v309_v51  ;;  %v314_v58 = vadd.f32 %v312_v54, %v3226_v53  ;;  %v2907_v60 = vpop.eup %2906 }
  0xfe   :  { %v2909_v61 = vpop.eup %2908  ;;  %v318_v62 = vsub.f32 1.0, %v2907_v60  ;;  %v325_v6 = vmul.f32 %v2907_v60, %v3154_v16 }
  0xff   :  { %v315_v59 = vadd.f32 %v313_v57, %v3231_v56  ;;  %2910 = vtanh.f32 %v314_v58  ;;  %v319_v63 = vsub.f32 1.0, %v2909_v61  ;;  %v326_v10 = vmul.f32 %v2909_v61, %v322_v1 }
 0x101   :  { %2912 = vtanh.f32 %v315_v59 }
 0x109   :  { %v2911_v2 = vpop.eup %2910 }
 0x10a   :  { %v320_v3 = vmul.f32 %v2911_v2, %v318_v62 }
 0x10b   :  { %v2913_v7 = vpop.eup %2912 }
 0x10c   :  { %v321_v8 = vmul.f32 %v2913_v7, %v319_v63  ;;  %v3237_v11 = vadd.f32 %v325_v6, %v320_v3 }
 0x10e   :  { %v3239_v14 = vadd.f32 %v326_v10, %v321_v8  ;;  %v596_v62 = vrot.slane %v3237_v11, 7 }
 0x110   :  { %v331_v15 = vrot.slane %v3239_v14, 7 }
 0x112   :  { %v333_v18 = vsel %vm332_vm3, %v331_v15, %v3237_v11 }
 0x113   :  { %2525 = vmatmul.mubr.msk.f32.vlgmr.msra.gmra.mrb[2].mxu1 %vm44_vm2, %v333_v18  ;;  %2536 = vmatmul.mubr.msk.f32.vlgmr.msra.gmra.mrb[4].mxu0 %vm44_vm2, %v333_v18 }
 0x114   :  { %2779 = vmatpush3.bf16.msra.mxu1 %v3156_v17  ;;  %2546 = vmatprep.mubr.msk.f32.mxu1 %vm3062_vm1, %v3063_v4 }
 0x115   :  { %2780 = vmatprep.subr.bf16.mxu1 %v3061_v0  ;;  %2785 = vmatpush3.bf16.msra.mxu0 %v3117_v5 }
 0x116   :  { %2786 = vmatprep.subr.bf16.mxu0 %v3061_v0  ;;  %2557 = vmatprep.mubr.msk.f32.mxu0 %vm3062_vm1, %v3063_v4 }
 0x118   :  { %2782 = vmatpush3.bf16.msra.mxu1 %v3172_v20 }
 0x119   :  { %2789 = vmatprep.subr.bf16.mxu1 %v3061_v0  ;;  %2788 = vmatpush3.bf16.msra.mxu0 %v3140_v12 }
 0x11a   :  { %2795 = vmatprep.subr.bf16.mxu0 %v3061_v0 }
 0x11b   :  { %2547 = vmatmul.mubr.msk.f32.vlgmr.msra.gmra.mrb[4].mxu1 %vm44_vm2, %v333_v18 }
 0x11c   :  { %2791 = vmatpush3.bf16.msra.mxu1 %v3131_v9  ;;  %2568 = vmatprep.mubr.msk.f32.mxu1 %vm3062_vm1, %v3063_v4 }
 0x11d   :  { %2792 = vmatprep.subr.bf16.mxu1 %v3061_v0 }
 0x120   :  { %2794 = vmatpush3.bf16.msra.mxu1 %v3144_v13 }
 0x121   :  { %2801 = vmatprep.subr.bf16.mxu1 %v3061_v0 }
 0x1e6   :  { %v402_v16 = vpop.f32.mrb[2].mxu1  ;;  %v472_v19 = vpop.f32.mrb[4].mxu0 }
 0x1e7   :  { %v477_v24 = vrot.slane %v402_v16, 7  ;;  %v481_v25 = vadd.f32 %v402_v16, %v3206_v23  ;;  %v2526_v26 = vpop.f32.mrb[3].mxu1  ;;  %v2537_v27 = vpop.f32.mrb[5].mxu0  ;;  %v495_v29 = vrot.slane %v472_v19, 7  ;;  %v499_v32 = vadd.f32 %v472_v19, %v3212_v28 }
 0x1e9   :  { %v480_v30 = vadd.f32 %v477_v24, %v3196_v21  ;;  %v2317_v31 = vmul.f32 -1.442695, %v481_v25  ;;  %v498_v34 = vadd.f32 %v495_v29, %v3201_v22  ;;  %v2319_v35 = vmul.f32 -1.442695, %v499_v32 }
 0x1eb   :  { %v2316_v33 = vmul.f32 -1.442695, %v480_v30  ;;  %2914 = vpow2.f32 %v2317_v31  ;;  %v2318_v38 = vmul.f32 -1.442695, %v498_v34 }
 0x1ed   :  { %2916 = vpow2.f32 %v2316_v33 }
 0x1ee   :  { %v578_v36 = vpop.f32.mrb[4].mxu1  ;;  %2918 = vpow2.f32 %v2319_v35 }
 0x1ef   :  { %v2548_v37 = vpop.f32.mrb[5].mxu1  ;;  %2920 = vpow2.f32 %v2318_v38  ;;  %v579_v47 = vadd.f32 %v3220_v46, %v578_v36 }
 0x1f1   :  { %v583_v50 = vrot.slane %v579_v47, 7 }
 0x1f5   :  { %v2915_v39 = vpop.eup %2914 }
 0x1f6   :  { %v489_v40 = vadd.f32 1.0, %v2915_v39 }
 0x1f7   :  { %v2917_v41 = vpop.eup %2916 }
 0x1f8   :  { %v488_v42 = vadd.f32 1.0, %v2917_v41  ;;  %2922 = vrcp.f32 %v489_v40  ;;  %v2919_v43 = vpop.eup %2918 }
 0x1f9   :  { %v2921_v44 = vpop.eup %2920  ;;  %v507_v45 = vadd.f32 1.0, %v2919_v43 }
 0x1fa   :  { %2924 = vrcp.f32 %v488_v42  ;;  %v506_v48 = vadd.f32 1.0, %v2921_v44 }
 0x1fb   :  { %2926 = vrcp.f32 %v507_v45 }
 0x1fc   :  { %2928 = vrcp.f32 %v506_v48 }
 0x202   :  { %v2923_v49 = vpop.eup %2922 }
 0x203   :  { %v587_v51 = vmul.f32 %v2923_v49, %v579_v47 }
 0x204   :  { %v2925_v52 = vpop.eup %2924 }
 0x205   :  { %v586_v54 = vmul.f32 %v2925_v52, %v583_v50  ;;  %v589_v55 = vadd.f32 %v587_v51, %v3231_v56  ;;  %v2927_v58 = vpop.eup %2926 }
 0x206   :  { %v2929_v59 = vpop.eup %2928  ;;  %v593_v60 = vsub.f32 1.0, %v2927_v58  ;;  %v600_v2 = vmul.f32 %v2927_v58, %v331_v15 }
 0x207   :  { %v588_v57 = vadd.f32 %v586_v54, %v3226_v53  ;;  %2930 = vtanh.f32 %v589_v55  ;;  %v592_v63 = vsub.f32 1.0, %v2929_v59  ;;  %v599_v7 = vmul.f32 %v2929_v59, %v596_v62 }
 0x209   :  { %2932 = vtanh.f32 %v588_v57 }
 0x211   :  { %v2931_v61 = vpop.eup %2930 }
 0x212   :  { %v595_v1 = vmul.f32 %v2931_v61, %v593_v60 }
 0x213   :  { %v2933_v3 = vpop.eup %2932 }
 0x214   :  { %v594_v6 = vmul.f32 %v2933_v3, %v592_v63  ;;  %v3277_v8 = vadd.f32 %v600_v2, %v595_v1 }
 0x216   :  { %v3279_v10 = vadd.f32 %v599_v7, %v594_v6  ;;  %v873_v60 = vrot.slane %v3277_v8, 7 }
 0x218   :  { %v605_v18 = vrot.slane %v3279_v10, 1  ;;  %v872_v58 = vrot.slane %v3279_v10, 7 }
 0x21a   :  { %v606_v16 = vsel %vm332_vm3, %v3277_v8, %v605_v18 }
 0x21b   :  { %2558 = vmatmul.mubr.msk.f32.vlgmr.msra.gmra.mrb[6].mxu0 %vm44_vm2, %v606_v16  ;;  %2569 = vmatmul.mubr.msk.f32.vlgmr.msra.gmra.mrb[6].mxu1 %vm44_vm2, %v606_v16 }
 0x21c   :  { %2797 = vmatpush3.bf16.msra.mxu0 %v3156_v17  ;;  %2579 = vmatprep.mubr.msk.f32.mxu0 %vm3062_vm1, %v3063_v4 }
 0x21d   :  { %2798 = vmatprep.subr.bf16.mxu0 %v3061_v0  ;;  %2803 = vmatpush3.bf16.msra.mxu1 %v3117_v5 }
 0x21e   :  { %2804 = vmatprep.subr.bf16.mxu1 %v3061_v0  ;;  %2590 = vmatprep.mubr.msk.f32.mxu1 %vm3062_vm1, %v3063_v4 }
 0x220   :  { %2800 = vmatpush3.bf16.msra.mxu0 %v3172_v20 }
 0x221   :  { %2807 = vmatprep.subr.bf16.mxu0 %v3061_v0  ;;  %2806 = vmatpush3.bf16.msra.mxu1 %v3140_v12 }
 0x222   :  { %2813 = vmatprep.subr.bf16.mxu1 %v3061_v0 }
 0x223   :  { %2580 = vmatmul.mubr.msk.f32.vlgmr.msra.gmra.mrb[8].mxu0 %vm44_vm2, %v606_v16 }
 0x224   :  { %2809 = vmatpush3.bf16.msra.mxu0 %v3131_v9  ;;  %2601 = vmatprep.mubr.msk.f32.mxu0 %vm3062_vm1, %v3063_v4 }
 0x225   :  { %2810 = vmatprep.subr.bf16.mxu0 %v3061_v0 }
 0x228   :  { %2812 = vmatpush3.bf16.msra.mxu0 %v3144_v13 }
 0x229   :  { %2819 = vmatprep.subr.bf16.mxu0 %v3061_v0 }
 0x2ee   :  { %v675_v15 = vpop.f32.mrb[6].mxu0  ;;  %v745_v19 = vpop.f32.mrb[6].mxu1 }
 0x2ef   :  { %v750_v24 = vrot.slane %v675_v15, 6  ;;  %v751_v25 = vrot.slane %v675_v15, 7  ;;  %v769_v26 = vrot.slane %v745_v19, 6  ;;  %v770_v27 = vrot.slane %v745_v19, 7  ;;  %v2559_v29 = vpop.f32.mrb[7].mxu0  ;;  %v2570_v30 = vpop.f32.mrb[7].mxu1 }
 0x2f1   :  { %v754_v31 = vadd.f32 %v750_v24, %v3196_v21  ;;  %v755_v32 = vadd.f32 %v751_v25, %v3206_v23  ;;  %v773_v33 = vadd.f32 %v769_v26, %v3201_v22  ;;  %v774_v34 = vadd.f32 %v770_v27, %v3212_v28 }
 0x2f2   :  { %v2271_v25 = vsel %vm2270_vm4, %v3237_v11, %v3279_v10  ;;  %v2272_v27 = vsel %vm2270_vm4, %v3239_v14, %v3277_v8 }
 0x2f3   :  { %v2323_v35 = vmul.f32 -1.442695, %v754_v31  ;;  %v2324_v36 = vmul.f32 -1.442695, %v755_v32  ;;  %v2325_v37 = vmul.f32 -1.442695, %v773_v33 }
 0x2f4   :  { %v2326_v38 = vmul.f32 -1.442695, %v774_v34 }
 0x2f5   :  { %2934 = vpow2.f32 %v2323_v35 }
 0x2f6   :  { %2936 = vpow2.f32 %v2324_v36  ;;  %v853_v39 = vpop.f32.mrb[8].mxu0 }
 0x2f7   :  { %2938 = vpow2.f32 %v2325_v37  ;;  %v2581_v40 = vpop.f32.mrb[9].mxu0  ;;  %v854_v50 = vadd.f32 %v3220_v46, %v853_v39 }
 0x2f8   :  { %2940 = vpow2.f32 %v2326_v38 }
 0x2f9   :  { %v858_v51 = vrot.slane %v854_v50, 6  ;;  %v859_v54 = vrot.slane %v854_v50, 7 }
 0x2ff   :  { %v2935_v41 = vpop.eup %2934 }
 0x300   :  { %v2937_v42 = vpop.eup %2936  ;;  %v762_v43 = vadd.f32 1.0, %v2935_v41 }
 0x301   :  { %v2939_v44 = vpop.eup %2938  ;;  %v763_v45 = vadd.f32 1.0, %v2937_v42 }
 0x302   :  { %v2941_v47 = vpop.eup %2940  ;;  %2942 = vrcp.f32 %v762_v43  ;;  %v781_v48 = vadd.f32 1.0, %v2939_v44 }
 0x303   :  { %2944 = vrcp.f32 %v763_v45  ;;  %v782_v49 = vadd.f32 1.0, %v2941_v47 }
 0x304   :  { %2946 = vrcp.f32 %v781_v48 }
 0x305   :  { %2948 = vrcp.f32 %v782_v49 }
 0x30c   :  { %v2943_v52 = vpop.eup %2942 }
 0x30d   :  { %v2945_v55 = vpop.eup %2944  ;;  %v862_v57 = vmul.f32 %v2943_v52, %v858_v51 }
 0x30e   :  { %v2947_v59 = vpop.eup %2946  ;;  %v863_v61 = vmul.f32 %v2945_v55, %v859_v54 }
 0x30f   :  { %v2949_v62 = vpop.eup %2948  ;;  %v864_v63 = vadd.f32 %v862_v57, %v3226_v53  ;;  %v876_v1 = vmul.f32 %v2947_v59, %v872_v58  ;;  %v868_v6 = vsub.f32 1.0, %v2947_v59 }
 0x310   :  { %v865_v2 = vadd.f32 %v863_v61, %v3231_v56  ;;  %v877_v3 = vmul.f32 %v2949_v62, %v873_v60  ;;  %v869_v18 = vsub.f32 1.0, %v2949_v62 }
 0x311   :  { %2950 = vtanh.f32 %v864_v63 }
 0x312   :  { %2952 = vtanh.f32 %v865_v2 }
 0x31b   :  { %v2951_v7 = vpop.eup %2950 }
 0x31c   :  { %v2953_v16 = vpop.eup %2952  ;;  %v870_v15 = vmul.f32 %v2951_v7, %v868_v6 }
 0x31d   :  { %v871_v19 = vmul.f32 %v2953_v16, %v869_v18 }
 0x31e   :  { %v3314_v24 = vadd.f32 %v876_v1, %v870_v15 }
 0x31f   :  { %v3318_v26 = vadd.f32 %v877_v3, %v871_v19 }
 0x320   :  { %v882_v29 = vrot.slane %v3314_v24, 2  ;;  %v3324_v30 = vsel %vm2273_vm5, %v2271_v25, %v3314_v24  ;;  %v1150_v2 = vrot.slane %v3314_v24, 7 }
 0x321   :  { %v883_v31 = vrot.slane %v3318_v26, 1  ;;  %v3328_v32 = vsel %vm2273_vm5, %v2272_v27, %v3318_v26  ;;  %v1151_v7 = vrot.slane %v3318_v26, 7 }
 0x323   :  { %v884_v33 = vsel %vm332_vm3, %v883_v31, %v882_v29 }
 0x324   :  { %2591 = vmatmul.mubr.msk.f32.vlgmr.msra.gmra.mrb[8].mxu1 %vm44_vm2, %v884_v33  ;;  %2602 = vmatmul.mubr.msk.f32.vlgmr.msra.gmra.mrb[10].mxu0 %vm44_vm2, %v884_v33 }
 0x325   :  { %2815 = vmatpush3.bf16.msra.mxu1 %v3156_v17  ;;  %2612 = vmatprep.mubr.msk.f32.mxu1 %vm3062_vm1, %v3063_v4 }
 0x326   :  { %2816 = vmatprep.subr.bf16.mxu1 %v3061_v0  ;;  %2821 = vmatpush3.bf16.msra.mxu0 %v3117_v5 }
 0x327   :  { %2822 = vmatprep.subr.bf16.mxu0 %v3061_v0  ;;  %2623 = vmatprep.mubr.msk.f32.mxu0 %vm3062_vm1, %v3063_v4 }
 0x329   :  { %2818 = vmatpush3.bf16.msra.mxu1 %v3172_v20 }
 0x32a   :  { %2825 = vmatprep.subr.bf16.mxu1 %v3061_v0  ;;  %2824 = vmatpush3.bf16.msra.mxu0 %v3140_v12 }
 0x32b   :  { %2831 = vmatprep.subr.bf16.mxu0 %v3061_v0 }
 0x32c   :  { %2613 = vmatmul.mubr.msk.f32.vlgmr.msra.gmra.mrb[10].mxu1 %vm44_vm2, %v884_v33 }
 0x32d   :  { %2827 = vmatpush3.bf16.msra.mxu1 %v3131_v9  ;;  %2634 = vmatprep.mubr.msk.f32.mxu1 %vm3062_vm1, %v3063_v4 }
 0x32e   :  { %2828 = vmatprep.subr.bf16.mxu1 %v3061_v0 }
 0x331   :  { %2830 = vmatpush3.bf16.msra.mxu1 %v3144_v13 }
 0x332   :  { %2837 = vmatprep.subr.bf16.mxu1 %v3061_v0 }
 0x3f7   :  { %v953_v11 = vpop.f32.mrb[8].mxu1  ;;  %v1023_v14 = vpop.f32.mrb[10].mxu0 }
 0x3f8   :  { %v1028_v8 = vrot.slane %v953_v11, 5  ;;  %v1029_v10 = vrot.slane %v953_v11, 6  ;;  %v1047_v34 = vrot.slane %v1023_v14, 5  ;;  %v1048_v35 = vrot.slane %v1023_v14, 6  ;;  %v2592_v36 = vpop.f32.mrb[9].mxu1  ;;  %v2603_v37 = vpop.f32.mrb[11].mxu0 }
 0x3fa   :  { %v1032_v38 = vadd.f32 %v1028_v8, %v3196_v21  ;;  %v1033_v39 = vadd.f32 %v1029_v10, %v3206_v23  ;;  %v1051_v40 = vadd.f32 %v1047_v34, %v3201_v22  ;;  %v1052_v41 = vadd.f32 %v1048_v35, %v3212_v28 }
 0x3fc   :  { %v2330_v42 = vmul.f32 -1.442695, %v1032_v38  ;;  %v2331_v43 = vmul.f32 -1.442695, %v1033_v39  ;;  %v2332_v44 = vmul.f32 -1.442695, %v1051_v40 }
 0x3fd   :  { %v2333_v45 = vmul.f32 -1.442695, %v1052_v41 }
 0x3fe   :  { %2954 = vpow2.f32 %v2330_v42 }
 0x3ff   :  { %2956 = vpow2.f32 %v2331_v43  ;;  %v1131_v47 = vpop.f32.mrb[10].mxu1 }
 0x400   :  { %2958 = vpow2.f32 %v2332_v44  ;;  %v2614_v48 = vpop.f32.mrb[11].mxu1  ;;  %v1132_v59 = vadd.f32 %v3220_v46, %v1131_v47 }
 0x401   :  { %2960 = vpow2.f32 %v2333_v45 }
 0x402   :  { %v1136_v60 = vrot.slane %v1132_v59, 5  ;;  %v1137_v62 = vrot.slane %v1132_v59, 6 }
 0x408   :  { %v2955_v49 = vpop.eup %2954 }
 0x409   :  { %v2957_v50 = vpop.eup %2956  ;;  %v1040_v51 = vadd.f32 1.0, %v2955_v49 }
 0x40a   :  { %v2959_v52 = vpop.eup %2958  ;;  %v1041_v54 = vadd.f32 1.0, %v2957_v50 }
 0x40b   :  { %v2961_v55 = vpop.eup %2960  ;;  %2962 = vrcp.f32 %v1040_v51  ;;  %v1059_v57 = vadd.f32 1.0, %v2959_v52 }
 0x40c   :  { %2964 = vrcp.f32 %v1041_v54  ;;  %v1060_v58 = vadd.f32 1.0, %v2961_v55 }
 0x40d   :  { %2966 = vrcp.f32 %v1059_v57 }
 0x40e   :  { %2968 = vrcp.f32 %v1060_v58 }
 0x415   :  { %v2963_v61 = vpop.eup %2962 }
 0x416   :  { %v2965_v63 = vpop.eup %2964  ;;  %v1140_v1 = vmul.f32 %v2963_v61, %v1136_v60 }
 0x417   :  { %v2967_v3 = vpop.eup %2966  ;;  %v1141_v6 = vmul.f32 %v2965_v63, %v1137_v62 }
 0x418   :  { %v2969_v18 = vpop.eup %2968  ;;  %v1142_v16 = vadd.f32 %v1140_v1, %v3226_v53  ;;  %v1154_v15 = vmul.f32 %v2967_v3, %v1150_v2  ;;  %v1146_v27 = vsub.f32 1.0, %v2967_v3 }
 0x419   :  { %v1143_v19 = vadd.f32 %v1141_v6, %v3231_v56  ;;  %v1155_v25 = vmul.f32 %v2969_v18, %v1151_v7  ;;  %v1147_v31 = vsub.f32 1.0, %v2969_v18 }
 0x41a   :  { %2970 = vtanh.f32 %v1142_v16 }
 0x41b   :  { %2972 = vtanh.f32 %v1143_v19 }
 0x424   :  { %v2971_v29 = vpop.eup %2970 }
 0x425   :  { %v2973_v33 = vpop.eup %2972  ;;  %v1148_v11 = vmul.f32 %v2971_v29, %v1146_v27 }
 0x426   :  { %v1149_v14 = vmul.f32 %v2973_v33, %v1147_v31 }
 0x427   :  { %v3361_v24 = vadd.f32 %v1154_v15, %v1148_v11 }
 0x428   :  { %v3363_v8 = vadd.f32 %v1155_v25, %v1149_v14 }
 0x429   :  { %v1160_v26 = vrot.slane %v3361_v24, 3  ;;  %v3368_v10 = vsel %vm2276_vm6, %v3324_v30, %v3361_v24  ;;  %v1428_v16 = vrot.slane %v3361_v24, 7 }
 0x42a   :  { %v1161_v34 = vrot.slane %v3363_v8, 2  ;;  %v3373_v35 = vsel %vm2276_vm6, %v3328_v32, %v3363_v8  ;;  %v1429_v25 = vrot.slane %v3363_v8, 7 }
 0x42c   :  { %v1162_v36 = vsel %vm332_vm3, %v1161_v34, %v1160_v26 }
 0x42d   :  { %2624 = vmatmul.mubr.msk.f32.vlgmr.msra.gmra.mrb[12].mxu0 %vm44_vm2, %v1162_v36  ;;  %2635 = vmatmul.mubr.msk.f32.vlgmr.msra.gmra.mrb[12].mxu1 %vm44_vm2, %v1162_v36 }
 0x42e   :  { %2833 = vmatpush3.bf16.msra.mxu0 %v3156_v17  ;;  %2645 = vmatprep.mubr.msk.f32.mxu0 %vm3062_vm1, %v3063_v4 }
 0x42f   :  { %2834 = vmatprep.subr.bf16.mxu0 %v3061_v0  ;;  %2839 = vmatpush3.bf16.msra.mxu1 %v3117_v5 }
 0x430   :  { %2840 = vmatprep.subr.bf16.mxu1 %v3061_v0  ;;  %2656 = vmatprep.mubr.msk.f32.mxu1 %vm3062_vm1, %v3063_v4 }
 0x432   :  { %2836 = vmatpush3.bf16.msra.mxu0 %v3172_v20 }
 0x433   :  { %2843 = vmatprep.subr.bf16.mxu0 %v3061_v0  ;;  %2842 = vmatpush3.bf16.msra.mxu1 %v3140_v12 }
 0x434   :  { %2849 = vmatprep.subr.bf16.mxu1 %v3061_v0 }
 0x435   :  { %2646 = vmatmul.mubr.msk.f32.vlgmr.msra.gmra.mrb[14].mxu0 %vm44_vm2, %v1162_v36 }
 0x436   :  { %2845 = vmatpush3.bf16.msra.mxu0 %v3131_v9  ;;  %2667 = vmatprep.mubr.msk.f32.mxu0 %vm3062_vm1, %v3063_v4 }
 0x437   :  { %2846 = vmatprep.subr.bf16.mxu0 %v3061_v0 }
 0x43a   :  { %2848 = vmatpush3.bf16.msra.mxu0 %v3144_v13 }
 0x43b   :  { %2855 = vmatprep.subr.bf16.mxu0 %v3061_v0 }
 0x500   :  { %v1231_v30 = vpop.f32.mrb[12].mxu0  ;;  %v1301_v32 = vpop.f32.mrb[12].mxu1 }
 0x501   :  { %v1306_v37 = vrot.slane %v1231_v30, 4  ;;  %v1307_v38 = vrot.slane %v1231_v30, 5  ;;  %v1325_v39 = vrot.slane %v1301_v32, 4  ;;  %v1326_v40 = vrot.slane %v1301_v32, 5  ;;  %v2625_v41 = vpop.f32.mrb[13].mxu0  ;;  %v2636_v42 = vpop.f32.mrb[13].mxu1 }
 0x503   :  { %v1310_v43 = vadd.f32 %v1306_v37, %v3196_v21  ;;  %v1311_v44 = vadd.f32 %v1307_v38, %v3206_v23  ;;  %v1329_v45 = vadd.f32 %v1325_v39, %v3201_v22  ;;  %v1330_v47 = vadd.f32 %v1326_v40, %v3212_v28 }
 0x505   :  { %v2337_v48 = vmul.f32 -1.442695, %v1310_v43  ;;  %v2338_v49 = vmul.f32 -1.442695, %v1311_v44  ;;  %v2339_v50 = vmul.f32 -1.442695, %v1329_v45 }
 0x506   :  { %v2340_v51 = vmul.f32 -1.442695, %v1330_v47 }
 0x507   :  { %2974 = vpow2.f32 %v2337_v48 }
 0x508   :  { %2976 = vpow2.f32 %v2338_v49  ;;  %v1409_v52 = vpop.f32.mrb[14].mxu0 }
 0x509   :  { %2978 = vpow2.f32 %v2339_v50  ;;  %v2647_v54 = vpop.f32.mrb[15].mxu0  ;;  %v1410_v1 = vadd.f32 %v3220_v46, %v1409_v52 }
 0x50a   :  { %2980 = vpow2.f32 %v2340_v51 }
 0x50b   :  { %v1414_v2 = vrot.slane %v1410_v1, 4  ;;  %v1415_v6 = vrot.slane %v1410_v1, 5 }
 0x511   :  { %v2975_v55 = vpop.eup %2974 }
 0x512   :  { %v2977_v57 = vpop.eup %2976  ;;  %v1318_v58 = vadd.f32 1.0, %v2975_v55 }
 0x513   :  { %v2979_v59 = vpop.eup %2978  ;;  %v1319_v60 = vadd.f32 1.0, %v2977_v57 }
 0x514   :  { %v2981_v61 = vpop.eup %2980  ;;  %2982 = vrcp.f32 %v1318_v58  ;;  %v1337_v62 = vadd.f32 1.0, %v2979_v59 }
 0x515   :  { %2984 = vrcp.f32 %v1319_v60  ;;  %v1338_v63 = vadd.f32 1.0, %v2981_v61 }
 0x516   :  { %2986 = vrcp.f32 %v1337_v62 }
 0x517   :  { %2988 = vrcp.f32 %v1338_v63 }
 0x51e   :  { %v2983_v3 = vpop.eup %2982 }
 0x51f   :  { %v2985_v7 = vpop.eup %2984  ;;  %v1418_v18 = vmul.f32 %v2983_v3, %v1414_v2 }
 0x520   :  { %v2987_v15 = vpop.eup %2986  ;;  %v1419_v19 = vmul.f32 %v2985_v7, %v1415_v6 }
 0x521   :  { %v2989_v27 = vpop.eup %2988  ;;  %v1420_v29 = vadd.f32 %v1418_v18, %v3226_v53  ;;  %v1432_v31 = vmul.f32 %v2987_v15, %v1428_v16  ;;  %v1424_v14 = vsub.f32 1.0, %v2987_v15 }
 0x522   :  { %v1421_v33 = vadd.f32 %v1419_v19, %v3231_v56  ;;  %v1433_v11 = vmul.f32 %v2989_v27, %v1429_v25  ;;  %v1425_v34 = vsub.f32 1.0, %v2989_v27 }
 0x523   :  { %2990 = vtanh.f32 %v1420_v29 }
 0x524   :  { %2992 = vtanh.f32 %v1421_v33 }
 0x52d   :  { %v2991_v26 = vpop.eup %2990 }
 0x52e   :  { %v2993_v36 = vpop.eup %2992  ;;  %v1426_v30 = vmul.f32 %v2991_v26, %v1424_v14 }
 0x52f   :  { %v1427_v32 = vmul.f32 %v2993_v36, %v1425_v34 }
 0x530   :  { %v3406_v24 = vadd.f32 %v1432_v31, %v1426_v30 }
 0x531   :  { %v3408_v37 = vadd.f32 %v1433_v11, %v1427_v32 }
 0x532   :  { %v1438_v8 = vrot.slane %v3406_v24, 4  ;;  %v3413_v38 = vsel %vm2279_vm7, %v3368_v10, %v3406_v24  ;;  %v1706_v29 = vrot.slane %v3406_v24, 7 }
 0x533   :  { %v1439_v39 = vrot.slane %v3408_v37, 3  ;;  %v3418_v40 = vsel %vm2279_vm7, %v3373_v35, %v3408_v37  ;;  %v1707_v11 = vrot.slane %v3408_v37, 7 }
 0x535   :  { %v1440_v41 = vsel %vm332_vm3, %v1439_v39, %v1438_v8 }
 0x536   :  { %2657 = vmatmul.mubr.msk.f32.vlgmr.msra.gmra.mrb[14].mxu1 %vm44_vm2, %v1440_v41  ;;  %2668 = vmatmul.mubr.msk.f32.vlgmr.msra.gmra.mrb[16].mxu0 %vm44_vm2, %v1440_v41 }
 0x537   :  { %2851 = vmatpush3.bf16.msra.mxu1 %v3156_v17  ;;  %2678 = vmatprep.mubr.msk.f32.mxu1 %vm3062_vm1, %v3063_v4 }
 0x538   :  { %2852 = vmatprep.subr.bf16.mxu1 %v3061_v0  ;;  %2857 = vmatpush3.bf16.msra.mxu0 %v3117_v5 }
 0x539   :  { %2858 = vmatprep.subr.bf16.mxu0 %v3061_v0  ;;  %2689 = vmatprep.mubr.msk.f32.mxu0 %vm3062_vm1, %v3063_v4 }
 0x53b   :  { %2854 = vmatpush3.bf16.msra.mxu1 %v3172_v20 }
 0x53c   :  { %2861 = vmatprep.subr.bf16.mxu1 %v3061_v0  ;;  %2860 = vmatpush3.bf16.msra.mxu0 %v3140_v12 }
 0x53d   :  { %2867 = vmatprep.subr.bf16.mxu0 %v3061_v0 }
 0x53e   :  { %2679 = vmatmul.mubr.msk.f32.vlgmr.msra.gmra.mrb[16].mxu1 %vm44_vm2, %v1440_v41 }
 0x53f   :  { %2863 = vmatpush3.bf16.msra.mxu1 %v3131_v9  ;;  %2700 = vmatprep.mubr.msk.f32.mxu1 %vm3062_vm1, %v3063_v4 }
 0x540   :  { %2864 = vmatprep.subr.bf16.mxu1 %v3061_v0 }
 0x543   :  { %2866 = vmatpush3.bf16.msra.mxu1 %v3144_v13 }
 0x544   :  { %2873 = vmatprep.subr.bf16.mxu1 %v3061_v0 }
 0x609   :  { %v1509_v10 = vpop.f32.mrb[14].mxu1  ;;  %v1579_v35 = vpop.f32.mrb[16].mxu0 }
 0x60a   :  { %v1584_v42 = vrot.slane %v1509_v10, 3  ;;  %v1585_v43 = vrot.slane %v1509_v10, 4  ;;  %v1603_v44 = vrot.slane %v1579_v35, 3  ;;  %v1604_v45 = vrot.slane %v1579_v35, 4  ;;  %v2658_v47 = vpop.f32.mrb[15].mxu1  ;;  %v2669_v48 = vpop.f32.mrb[17].mxu0 }
 0x60c   :  { %v1588_v49 = vadd.f32 %v1584_v42, %v3196_v21  ;;  %v1589_v50 = vadd.f32 %v1585_v43, %v3206_v23  ;;  %v1607_v51 = vadd.f32 %v1603_v44, %v3201_v22  ;;  %v1608_v52 = vadd.f32 %v1604_v45, %v3212_v28 }
 0x60e   :  { %v2344_v54 = vmul.f32 -1.442695, %v1588_v49  ;;  %v2345_v55 = vmul.f32 -1.442695, %v1589_v50  ;;  %v2346_v57 = vmul.f32 -1.442695, %v1607_v51 }
 0x60f   :  { %v2347_v58 = vmul.f32 -1.442695, %v1608_v52 }
 0x610   :  { %2994 = vpow2.f32 %v2344_v54 }
 0x611   :  { %2996 = vpow2.f32 %v2345_v55  ;;  %v1687_v59 = vpop.f32.mrb[16].mxu1 }
 0x612   :  { %2998 = vpow2.f32 %v2346_v57  ;;  %v2680_v60 = vpop.f32.mrb[17].mxu1  ;;  %v1688_v18 = vadd.f32 %v3220_v46, %v1687_v59 }
 0x613   :  { %3000 = vpow2.f32 %v2347_v58 }
 0x614   :  { %v1692_v16 = vrot.slane %v1688_v18, 3  ;;  %v1693_v19 = vrot.slane %v1688_v18, 4 }
 0x61a   :  { %v2995_v61 = vpop.eup %2994 }
 0x61b   :  { %v2997_v62 = vpop.eup %2996  ;;  %v1596_v63 = vadd.f32 1.0, %v2995_v61 }
 0x61c   :  { %v2999_v1 = vpop.eup %2998  ;;  %v1597_v2 = vadd.f32 1.0, %v2997_v62 }
 0x61d   :  { %v3001_v3 = vpop.eup %3000  ;;  %3002 = vrcp.f32 %v1596_v63  ;;  %v1615_v6 = vadd.f32 1.0, %v2999_v1 }
 0x61e   :  { %3004 = vrcp.f32 %v1597_v2  ;;  %v1616_v7 = vadd.f32 1.0, %v3001_v3 }
 0x61f   :  { %3006 = vrcp.f32 %v1615_v6 }
 0x620   :  { %3008 = vrcp.f32 %v1616_v7 }
 0x627   :  { %v3003_v15 = vpop.eup %3002 }
 0x628   :  { %v3005_v25 = vpop.eup %3004  ;;  %v1696_v27 = vmul.f32 %v3003_v15, %v1692_v16 }
 0x629   :  { %v3007_v31 = vpop.eup %3006  ;;  %v1697_v33 = vmul.f32 %v3005_v25, %v1693_v19 }
 0x62a   :  { %v3009_v14 = vpop.eup %3008  ;;  %v1698_v26 = vadd.f32 %v1696_v27, %v3226_v53  ;;  %v1710_v34 = vmul.f32 %v3007_v31, %v1706_v29  ;;  %v1702_v32 = vsub.f32 1.0, %v3007_v31 }
 0x62b   :  { %v1699_v36 = vadd.f32 %v1697_v33, %v3231_v56  ;;  %v1711_v30 = vmul.f32 %v3009_v14, %v1707_v11  ;;  %v1703_v39 = vsub.f32 1.0, %v3009_v14 }
 0x62c   :  { %3010 = vtanh.f32 %v1698_v26 }
 0x62d   :  { %3012 = vtanh.f32 %v1699_v36 }
 0x636   :  { %v3011_v8 = vpop.eup %3010 }
 0x637   :  { %v3013_v41 = vpop.eup %3012  ;;  %v1704_v10 = vmul.f32 %v3011_v8, %v1702_v32 }
 0x638   :  { %v1705_v35 = vmul.f32 %v3013_v41, %v1703_v39 }
 0x639   :  { %v3451_v24 = vadd.f32 %v1710_v34, %v1704_v10 }
 0x63a   :  { %v3453_v42 = vadd.f32 %v1711_v30, %v1705_v35 }
 0x63b   :  { %v1716_v37 = vrot.slane %v3451_v24, 5  ;;  %v3458_v43 = vsel %vm2282_vm8, %v3413_v38, %v3451_v24  ;;  %v1984_v19 = vrot.slane %v3451_v24, 7 }
 0x63c   :  { %v1717_v44 = vrot.slane %v3453_v42, 4  ;;  %v3463_v45 = vsel %vm2282_vm8, %v3418_v40, %v3453_v42  ;;  %v1985_v29 = vrot.slane %v3453_v42, 7 }
 0x63e   :  { %v1718_v47 = vsel %vm332_vm3, %v1717_v44, %v1716_v37 }
 0x63f   :  { %2690 = vmatmul.mubr.msk.f32.vlgmr.msra.gmra.mrb[18].mxu0 %vm44_vm2, %v1718_v47  ;;  %2701 = vmatmul.mubr.msk.f32.vlgmr.msra.gmra.mrb[18].mxu1 %vm44_vm2, %v1718_v47 }
 0x640   :  { %2869 = vmatpush3.bf16.msra.mxu0 %v3156_v17  ;;  %2711 = vmatprep.mubr.msk.f32.mxu0 %vm3062_vm1, %v3063_v4 }
 0x641   :  { %2870 = vmatprep.subr.bf16.mxu0 %v3061_v0  ;;  %2875 = vmatpush3.bf16.msra.mxu1 %v3117_v5 }
 0x642   :  { %2876 = vmatprep.subr.bf16.mxu1 %v3061_v0  ;;  %2722 = vmatprep.mubr.msk.f32.mxu1 %vm3062_vm1, %v3063_v4 }
 0x644   :  { %2872 = vmatpush3.bf16.msra.mxu0 %v3172_v20 }
 0x645   :  { %2879 = vmatprep.subr.bf16.mxu0 %v3061_v0  ;;  %2878 = vmatpush3.bf16.msra.mxu1 %v3140_v12 }
 0x646   :  { %2885 = vmatprep.subr.bf16.mxu1 %v3061_v0 }
 0x647   :  { %2712 = vmatmul.mubr.msk.f32.vlgmr.msra.gmra.mrb[20].mxu0 %vm44_vm2, %v1718_v47 }
 0x648   :  { %2881 = vmatpush3.bf16.msra.mxu0 %v3131_v9  ;;  %2733 = vmatprep.mubr.msk.f32.mxu0 %vm3062_vm1, %v3063_v4 }
 0x649   :  { %2882 = vmatprep.subr.bf16.mxu0 %v3061_v0 }
 0x64c   :  { %2884 = vmatpush3.bf16.msra.mxu0 %v3144_v13 }
 0x712   :  { %v1787_v5 = vpop.f32.mrb[18].mxu0  ;;  %v1857_v38 = vpop.f32.mrb[18].mxu1 }
 0x713   :  { %v1862_v40 = vrot.slane %v1787_v5, 2  ;;  %v1863_v48 = vrot.slane %v1787_v5, 3  ;;  %v1881_v49 = vrot.slane %v1857_v38, 2  ;;  %v1882_v50 = vrot.slane %v1857_v38, 3  ;;  %v2691_v12 = vpop.f32.mrb[19].mxu0  ;;  %v2702_v51 = vpop.f32.mrb[19].mxu1 }
 0x715   :  { %v1866_v52 = vadd.f32 %v1862_v40, %v3196_v21  ;;  %v1867_v54 = vadd.f32 %v1863_v48, %v3206_v23  ;;  %v1885_v9 = vadd.f32 %v1881_v49, %v3201_v22  ;;  %v1886_v55 = vadd.f32 %v1882_v50, %v3212_v28  ;;  %v3057_v49 = vld [vmem:[%s3555_s1 + $0x8] sm:$0xff] }
 0x717   :  { %v2351_v57 = vmul.f32 -1.442695, %v1866_v52  ;;  %v2352_v58 = vmul.f32 -1.442695, %v1867_v54  ;;  %v2353_v59 = vmul.f32 -1.442695, %v1885_v9 }
 0x718   :  { %v2354_v13 = vmul.f32 -1.442695, %v1886_v55 }
 0x719   :  { %3014 = vpow2.f32 %v2351_v57 }
 0x71a   :  { %3016 = vpow2.f32 %v2352_v58  ;;  %v1965_v60 = vpop.f32.mrb[20].mxu0 }
 0x71b   :  { %3018 = vpow2.f32 %v2353_v59  ;;  %v2713_v61 = vpop.f32.mrb[21].mxu0  ;;  %v1966_v3 = vadd.f32 %v3220_v46, %v1965_v60 }
 0x71c   :  { %3020 = vpow2.f32 %v2354_v13 }
 0x71d   :  { %v1970_v6 = vrot.slane %v1966_v3, 2  ;;  %v1971_v18 = vrot.slane %v1966_v3, 3 }
 0x723   :  { %v3015_v62 = vpop.eup %3014 }
 0x724   :  { %v3017_v63 = vpop.eup %3016  ;;  %v1874_v1 = vadd.f32 1.0, %v3015_v62 }
 0x725   :  { %v3019_v21 = vpop.eup %3018  ;;  %v1875_v2 = vadd.f32 1.0, %v3017_v63 }
 0x726   :  { %v3021_v23 = vpop.eup %3020  ;;  %3022 = vrcp.f32 %v1874_v1  ;;  %v1893_v22 = vadd.f32 1.0, %v3019_v21  ;;  %v3058_v1 = vld [vmem:[%s3556_s6] ss:$0 sm:$0xff] }
 0x727   :  { %3024 = vrcp.f32 %v1875_v2  ;;  %v1894_v28 = vadd.f32 1.0, %v3021_v23 }
 0x728   :  { %3026 = vrcp.f32 %v1893_v22 }
 0x729   :  { %3028 = vrcp.f32 %v1894_v28 }
 0x730   :  { %v3023_v7 = vpop.eup %3022 }
 0x731   :  { %v3025_v16 = vpop.eup %3024  ;;  %v1974_v15 = vmul.f32 %v3023_v7, %v1970_v6 }
 0x732   :  { %v3027_v25 = vpop.eup %3026  ;;  %v1975_v27 = vmul.f32 %v3025_v16, %v1971_v18 }
 0x733   :  { %v3029_v31 = vpop.eup %3028  ;;  %v1976_v33 = vadd.f32 %v1974_v15, %v3226_v53  ;;  %v1988_v11 = vmul.f32 %v3027_v25, %v1984_v19  ;;  %v1980_v46 = vsub.f32 1.0, %v3027_v25  ;;  %v3059_v25 = vld [vmem:[%s3557_s2] sm:$0xff] }
 0x734   :  { %v1977_v14 = vadd.f32 %v1975_v27, %v3231_v56  ;;  %v1989_v26 = vmul.f32 %v3029_v31, %v1985_v29  ;;  %v1981_v36 = vsub.f32 1.0, %v3029_v31  ;;  %v3060_v31 = vld [vmem:[%s3557_s2 + $0x8] sm:$0xff] }
 0x735   :  { %3030 = vtanh.f32 %v1976_v33 }
 0x736   :  { %3032 = vtanh.f32 %v1977_v14 }
 0x73f   :  { %v3031_v34 = vpop.eup %3030 }
 0x740   :  { %v3033_v30 = vpop.eup %3032  ;;  %v1982_v32 = vmul.f32 %v3031_v34, %v1980_v46 }
 0x741   :  { %v1983_v8 = vmul.f32 %v3033_v30, %v1981_v36 }
 0x742   :  { %v3495_v39 = vadd.f32 %v1988_v11, %v1982_v32 }
 0x743   :  { %v3497_v41 = vadd.f32 %v1989_v26, %v1983_v8 }
 0x744   :  { %v1994_v10 = vrot.slane %v3495_v39, 6  ;;  %v3502_v53 = vsel %vm2285_vm9, %v3458_v43, %v3495_v39  ;;  %v2262_v3 = vrot.slane %v3495_v39, 7 }
 0x745   :  { %v1995_v56 = vrot.slane %v3497_v41, 5  ;;  %v3507_v35 = vsel %vm2285_vm9, %v3463_v45, %v3497_v41  ;;  %v2263_v18 = vrot.slane %v3497_v41, 7 }
 0x747   :  { %v1996_v24 = vsel %vm332_vm3, %v1995_v56, %v1994_v10 }
 0x748   :  { %2723 = vmatmul.mubr.msk.f32.vlgmr.msra.gmra.mrb[20].mxu1 %vm44_vm2, %v1996_v24  ;;  %2734 = vmatmul.mubr.msk.f32.vlgmr.msra.gmra.mrb[22].mxu0 %vm44_vm2, %v1996_v24 }
 0x749   :  { %2887 = vmatpush3.bf16.msra.mxu1 %v3156_v17  ;;  %2744 = vmatprep.mubr.msk.f32.mxu1 %vm3062_vm1, %v3063_v4  ;;  %v3054_v17 = vld [vmem:[%s3554_s0] sm:$0xff] }
 0x74a   :  { %2888 = vmatprep.subr.bf16.mxu1 %v3061_v0  ;;  %v3055_v0 = vld [vmem:[%s3554_s0 + $0x8] sm:$0xff] }
 0x74d   :  { %2890 = vmatpush3.bf16.msra.mxu1 %v3172_v20  ;;  %v3056_v20 = vld [vmem:[%s3555_s1] sm:$0xff] }
 0x750   :  { %2745 = vmatmul.mubr.msk.f32.vlgmr.msra.gmra.mrb[22].mxu1 %vm44_vm2, %v1996_v24 }
 0x81b   :  { %v2065_v42 = vpop.f32.mrb[20].mxu1  ;;  %v2135_v37 = vpop.f32.mrb[22].mxu0 }
 0x81c   :  { %v2140_v43 = vrot.slane %v2065_v42, 1  ;;  %v2141_v44 = vrot.slane %v2065_v42, 2  ;;  %v2159_v45 = vrot.slane %v2135_v37, 1  ;;  %v2160_v47 = vrot.slane %v2135_v37, 2  ;;  %v2724_v5 = vpop.f32.mrb[21].mxu1  ;;  %v2735_v38 = vpop.f32.mrb[23].mxu0 }
 0x81e   :  { %v2144_v40 = vadd.f32 %v3054_v17, %v2140_v43  ;;  %v2145_v4 = vadd.f32 %v3055_v0, %v2141_v44  ;;  %v2163_v48 = vadd.f32 %v3056_v20, %v2159_v45  ;;  %v2164_v50 = vadd.f32 %v3057_v49, %v2160_v47 }
 0x820   :  { %v2358_v12 = vmul.f32 -1.442695, %v2144_v40  ;;  %v2359_v51 = vmul.f32 -1.442695, %v2145_v4  ;;  %v2360_v52 = vmul.f32 -1.442695, %v2163_v48 }
 0x821   :  { %v2361_v54 = vmul.f32 -1.442695, %v2164_v50 }
 0x822   :  { %3034 = vpow2.f32 %v2358_v12 }
 0x823   :  { %3036 = vpow2.f32 %v2359_v51  ;;  %v2243_v9 = vpop.f32.mrb[22].mxu1 }
 0x824   :  { %3038 = vpow2.f32 %v2360_v52  ;;  %v2746_v55 = vpop.f32.mrb[23].mxu1  ;;  %v2244_v21 = vadd.f32 %v3058_v1, %v2243_v9 }
 0x825   :  { %3040 = vpow2.f32 %v2361_v54 }
 0x826   :  { %v2248_v2 = vrot.slane %v2244_v21, 1  ;;  %v2249_v22 = vrot.slane %v2244_v21, 2 }
 0x82c   :  { %v3035_v57 = vpop.eup %3034 }
 0x82d   :  { %v3037_v58 = vpop.eup %3036  ;;  %v2152_v59 = vadd.f32 1.0, %v3035_v57 }
 0x82e   :  { %v3039_v13 = vpop.eup %3038  ;;  %v2153_v60 = vadd.f32 1.0, %v3037_v58 }
 0x82f   :  { %v3041_v61 = vpop.eup %3040  ;;  %3042 = vrcp.f32 %v2152_v59  ;;  %v2171_v62 = vadd.f32 1.0, %v3039_v13 }
 0x830   :  { %3044 = vrcp.f32 %v2153_v60  ;;  %v2172_v63 = vadd.f32 1.0, %v3041_v61 }
 0x831   :  { %3046 = vrcp.f32 %v2171_v62 }
 0x832   :  { %3048 = vrcp.f32 %v2172_v63 }
 0x839   :  { %v3043_v23 = vpop.eup %3042 }
 0x83a   :  { %v3045_v28 = vpop.eup %3044  ;;  %v2252_v6 = vmul.f32 %v3043_v23, %v2248_v2 }
 0x83b   :  { %v3047_v7 = vpop.eup %3046  ;;  %v2253_v16 = vmul.f32 %v3045_v28, %v2249_v22 }
 0x83c   :  { %v3049_v15 = vpop.eup %3048  ;;  %v2266_v19 = vmul.f32 %v3047_v7, %v2262_v3  ;;  %v2254_v27 = vadd.f32 %v3059_v25, %v2252_v6  ;;  %v2258_v11 = vsub.f32 1.0, %v3047_v7 }
 0x83d   :  { %v2267_v29 = vmul.f32 %v3049_v15, %v2263_v18  ;;  %v2255_v33 = vadd.f32 %v3060_v31, %v2253_v16  ;;  %v2259_v26 = vsub.f32 1.0, %v3049_v15 }
 0x83e   :  { %3050 = vtanh.f32 %v2254_v27 }
 0x83f   :  { %3052 = vtanh.f32 %v2255_v33 }
 0x848   :  { %v3051_v14 = vpop.eup %3050 }
 0x849   :  { %v3053_v46 = vpop.eup %3052  ;;  %v2260_v34 = vmul.f32 %v3051_v14, %v2258_v11 }
 0x84a   :  { %v2261_v36 = vmul.f32 %v3053_v46, %v2259_v26 }
 0x84b   :  { %v2268_v30 = vadd.f32 %v2266_v19, %v2260_v34 }
 0x84c   :  { %v2269_v32 = vadd.f32 %v2267_v29, %v2261_v36 }
 0x84d   :  { %v2289_v8 = vsel %vm2288_vm10, %v3502_v53, %v2268_v30  ;;  %2299 = vst.msk [vmem:[#allocation2 - $0x7] sm:$0x80] %vm2298_vm11, %v2268_v30 }
 0x84e   :  { %v2290_v39 = vsel %vm2288_vm10, %v3507_v35, %v2269_v32  ;;  %2291 = vst.msk [vmem:[%s3558_s7] sm:$0xff] %vm44_vm2, %v2289_v8  ;;  %v2295_v41 = vrot.slane %v2269_v32, 7 }
 0x84f   :  { %2292 = vst.msk [vmem:[%s3558_s7 + $0x8] sm:$0xff] %vm44_vm2, %v2290_v39 }
 0x850   :  { %2301 = vst.msk [vmem:[#allocation2 + $0x1] sm:$0x1] %vm2300_vm12, %v2295_v41 }

</bundles_post_ra>
